<compile_context>
chip_gen: v5e
topology: v5e:2x2
jax: 0.10.0
libtpu: 0.0.40
codegen_flags: <defaults>
</compile_context>

<pallas_src>
from functools import partial

import numpy as np
import jax
import jax.numpy as jnp
from jax.experimental import pallas as pl
from jax.experimental.pallas import tpu as pltpu


def lstm_predictor_kernel(x_ref, w_ih0_ref, w_hh0_ref, b0_ref,
                          w_ih_r_ref, w_hh_r_ref, b_r_ref,
                          w_fc_ref, b_fc_ref, out_ref, gx_ref, *, num_layers):
    # x_ref:      (T*Bp, Dp)        bf16  time-major, batch/feature-padded input rows
    # w_ih0_ref:  (Dp, 4H)          bf16  layer-0 input->gate weights (transposed, g-cols x2)
    # w_hh0_ref:  (H, 4H)           bf16  layer-0 hidden->gate weights (transposed, g-cols x2)
    # b0_ref:     (1, 4H)           f32   layer-0 b_ih + b_hh (g-cols x2)
    # w_ih_r_ref: (max(L-1,1),H,4H) bf16  layers>=1 input->gate weights (g-cols x2)
    # w_hh_r_ref: (max(L-1,1),H,4H) bf16  layers>=1 hidden->gate weights (g-cols x2)
    # b_r_ref:    (max(L-1,1),1,4H) f32   layers>=1 summed biases (g-cols x2)
    # w_fc_ref:   (H, Op) bf16, b_fc_ref: (1, Op) f32   (Op = 128, lane-dense)
    # out_ref:    (Bp, Op) f32
    # gx_ref:     (T*Bp, 4H) f32 scratch: hoisted layer-0 input-projection gates
    TB, _ = x_ref.shape
    H = w_hh0_ref.shape[0]
    Bp = out_ref.shape[0]
    T = TB // Bp
    L = num_layers

    # ---- hoisted layer-0 input projection (+ bias, added once): one big MXU matmul ----
    gx_ref[...] = (jnp.dot(x_ref[...], w_ih0_ref[...],
                           preferred_element_type=jnp.float32) + b0_ref[...])

    # hoist weight / bias reads (static indices) out of the unrolled time loop
    w_hh0 = w_hh0_ref[...]                                  # (H, 4H) bf16
    w_ih_r = [w_ih_r_ref[l - 1] for l in range(1, L)]       # (H, 4H) bf16 each
    w_hh_r = [w_hh_r_ref[l - 1] for l in range(1, L)]
    b_r = [jnp.broadcast_to(b_r_ref[l - 1], (Bp, 4 * H)) for l in range(1, L)]

    h = [jnp.zeros((Bp, H), jnp.float32) for _ in range(L)]
    c = [jnp.zeros((Bp, H), jnp.float32) for _ in range(L)]

    def gate_update(gates, c_prev):
        sig = jax.nn.sigmoid(gates)                         # one whole-tile EUP sigmoid
        i_g = sig[:, 0 * H:1 * H]
        f_g = sig[:, 1 * H:2 * H]
        g_g = 2.0 * sig[:, 2 * H:3 * H] - 1.0               # tanh(a) via prescaled-by-2 weights
        o_g = sig[:, 3 * H:4 * H]
        c_new = f_g * c_prev + i_g * g_g
        h_new = o_g * jnp.tanh(c_new)
        return h_new, c_new

    # fully unrolled wavefront: layer-l step t right after layer-(l-1) step t
    for t in range(T):
        gates0 = (gx_ref[pl.ds(t * Bp, Bp), :]
                  + jnp.dot(h[0].astype(jnp.bfloat16), w_hh0,
                            preferred_element_type=jnp.float32))      # (Bp, 4H) f32
        h[0], c[0] = gate_update(gates0, c[0])

        for l in range(1, L):
            # fused input projection: two independent back-to-back (Bp,H)@(H,4H) dots
            gates = (b_r[l - 1]
                     + jnp.dot(h[l - 1].astype(jnp.bfloat16), w_ih_r[l - 1],
                               preferred_element_type=jnp.float32)
                     + jnp.dot(h[l].astype(jnp.bfloat16), w_hh_r[l - 1],
                               preferred_element_type=jnp.float32))
            h[l], c[l] = gate_update(gates, c[l])

    # last timestep hidden state of the last layer -> fc -> sigmoid (lane-dense output)
    logits = (jnp.dot(h[L - 1].astype(jnp.bfloat16), w_fc_ref[...],
                      preferred_element_type=jnp.float32) + b_fc_ref[...])
    out_ref[...] = jax.nn.sigmoid(logits)


def make_params(key, input_dim, hidden_dim, num_layers, output_dim):
    H = hidden_dim
    k = 1.0 / np.sqrt(H)
    keys = jax.random.split(key, num_layers * 4 + 2)
    params = {"w_ih": [], "w_hh": [], "b_ih": [], "b_hh": []}
    idx = 0
    for l in range(num_layers):
        in_dim = input_dim if l == 0 else H
        params["w_ih"].append(jax.random.uniform(keys[idx], (4 * H, in_dim),
                                                 jnp.float32, -k, k)); idx += 1
        params["w_hh"].append(jax.random.uniform(keys[idx], (4 * H, H),
                                                 jnp.float32, -k, k)); idx += 1
        params["b_ih"].append(jax.random.uniform(keys[idx], (4 * H,),
                                                 jnp.float32, -k, k)); idx += 1
        params["b_hh"].append(jax.random.uniform(keys[idx], (4 * H,),
                                                 jnp.float32, -k, k)); idx += 1
    params["w_fc"] = jax.random.uniform(keys[idx], (output_dim, H),
                                        jnp.float32, -k, k); idx += 1
    params["b_fc"] = jax.random.uniform(keys[idx], (output_dim,),
                                        jnp.float32, -k, k)
    return params


def prepare_params(params, input_dim, hidden_dim, num_layers, output_dim):
    """One-time weight packing: transpose, pad, g-gate prescale (x2), bf16 cast, stack."""
    H, L, O = hidden_dim, num_layers, output_dim
    SUB = 8
    Dp = ((max(input_dim, H) + SUB - 1) // SUB) * SUB
    Op = 128                                                 # lane-dense FC output width

    # tanh(a) = 2*sigmoid(2a) - 1  -> prescale the g-gate (2H:3H) weight/bias columns by 2
    g_scale = jnp.concatenate([jnp.ones((2 * H,), jnp.float32),
                               2.0 * jnp.ones((H,), jnp.float32),
                               jnp.ones((H,), jnp.float32)])

    w_ih0 = params["w_ih"][0].T                              # (D, 4H)
    w_ih0 = jnp.pad(w_ih0, ((0, Dp - w_ih0.shape[0]), (0, 0)))
    w_ih0 = (w_ih0 * g_scale).astype(jnp.bfloat16)           # (Dp, 4H)
    w_hh0 = (params["w_hh"][0].T * g_scale).astype(jnp.bfloat16)      # (H, 4H)
    b0 = ((params["b_ih"][0] + params["b_hh"][0]) * g_scale
          ).reshape(1, 4 * H).astype(jnp.float32)

    n_rest = max(L - 1, 1)                                   # dummy zero entry if L == 1
    w_ih_r = jnp.zeros((n_rest, H, 4 * H), jnp.float32)
    w_hh_r = jnp.zeros((n_rest, H, 4 * H), jnp.float32)
    b_r = jnp.zeros((n_rest, 1, 4 * H), jnp.float32)
    for l in range(1, L):
        w_ih_r = w_ih_r.at[l - 1].set(params["w_ih"][l].T * g_scale)
        w_hh_r = w_hh_r.at[l - 1].set(params["w_hh"][l].T * g_scale)
        b_r = b_r.at[l - 1].set(((params["b_ih"][l] + params["b_hh"][l]) * g_scale
                                 ).reshape(1, 4 * H))
    w_ih_r = w_ih_r.astype(jnp.bfloat16)
    w_hh_r = w_hh_r.astype(jnp.bfloat16)

    w_fc = jnp.pad(params["w_fc"].T, ((0, 0), (0, Op - O))).astype(jnp.bfloat16)  # (H, Op)
    b_fc = jnp.pad(params["b_fc"].reshape(1, O), ((0, 0), (0, Op - O))).astype(jnp.float32)

    return {"w_ih0": w_ih0, "w_hh0": w_hh0, "b0": b0,
            "w_ih_r": w_ih_r, "w_hh_r": w_hh_r, "b_r": b_r,
            "w_fc": w_fc, "b_fc": b_fc}


@partial(jax.jit, static_argnames=("hidden_dim", "num_layers", "output_dim"))
def lstm_predictor_pallas(x, packed, *, hidden_dim, num_layers, output_dim):
    B, T, D = x.shape
    H, L, O = hidden_dim, num_layers, output_dim
    SUB = 8
    Bp = ((max(B, SUB) + SUB - 1) // SUB) * SUB              # pad batch to >= 8 sublanes
    Dp = packed["w_ih0"].shape[0]
    Op = packed["w_fc"].shape[1]

    # per-call glue (under the same jit as the pallas_call): time-major, pad, flatten, bf16
    x_tm = jnp.transpose(x, (1, 0, 2)).astype(jnp.float32)              # (T, B, D)
    x_tm = jnp.pad(x_tm, ((0, 0), (0, Bp - B), (0, Dp - D)))            # (T, Bp, Dp)
    x_flat = x_tm.reshape(T * Bp, Dp).astype(jnp.bfloat16)

    kernel = partial(lstm_predictor_kernel, num_layers=L)
    out = pl.pallas_call(
        kernel,
        out_shape=jax.ShapeDtypeStruct((Bp, Op), jnp.float32),
        in_specs=[pl.BlockSpec(memory_space=pltpu.MemorySpace.VMEM)] * 9,
        out_specs=pl.BlockSpec(memory_space=pltpu.MemorySpace.VMEM),
        scratch_shapes=[
            pltpu.VMEM((T * Bp, 4 * H), jnp.float32),   # gx: hoisted layer-0 input-proj gates
        ],
    )(x_flat, packed["w_ih0"], packed["w_hh0"], packed["b0"],
      packed["w_ih_r"], packed["w_hh_r"], packed["b_r"],
      packed["w_fc"], packed["b_fc"])
    return out[:B, :O]


def lstm_predictor_ref(x, params, hidden_dim, num_layers, output_dim):
    """Pure-JAX f32 reference matching PyTorch nn.LSTM (eval) + Linear + Sigmoid."""
    B, T, D = x.shape
    H = hidden_dim
    inp = x.astype(jnp.float32)
    for l in range(num_layers):
        w_ih = params["w_ih"][l]
        w_hh = params["w_hh"][l]
        b = params["b_ih"][l] + params["b_hh"][l]
        h = jnp.zeros((B, H), jnp.float32)
        c = jnp.zeros((B, H), jnp.float32)
        outs = []
        for t in range(T):
            gates = inp[:, t, :] @ w_ih.T + h @ w_hh.T + b
            i = jax.nn.sigmoid(gates[:, :H])
            f = jax.nn.sigmoid(gates[:, H:2 * H])
            g = jnp.tanh(gates[:, 2 * H:3 * H])
            o = jax.nn.sigmoid(gates[:, 3 * H:4 * H])
            c = f * c + i * g
            h = o * jnp.tanh(c)
            outs.append(h)
        inp = jnp.stack(outs, axis=1)
    last = inp[:, -1, :]
    return jax.nn.sigmoid(last @ params["w_fc"].T + params["b_fc"])


if __name__ == "__main__":
    input_dim, hidden_dim, num_layers, output_dim = 4, 32, 2, 1
    B, T = 2, 8

    key = jax.random.PRNGKey(0)
    k_x, k_p = jax.random.split(key)
    x = jax.random.normal(k_x, (B, T, input_dim), jnp.float32)
    params = make_params(k_p, input_dim, hidden_dim, num_layers, output_dim)

    packed = prepare_params(params, input_dim, hidden_dim, num_layers, output_dim)
    packed = jax.block_until_ready(packed)                 # one-time weight prep

    out = lstm_predictor_pallas(x, packed, hidden_dim=hidden_dim,
                                num_layers=num_layers, output_dim=output_dim)
    out = jax.block_until_ready(out)

    ref = lstm_predictor_ref(x, params, hidden_dim, num_layers, output_dim)
    # Kernel uses bf16 matmul operands (f32 accumulation / elementwise); tolerance reflects that.
    np.testing.assert_allclose(np.asarray(out), np.asarray(ref),
                               rtol=2e-2, atol=2e-2)
    print("KERNEL_OK")
</pallas_src>

<mosaic_0001>
module attributes {stable_mosaic.version = 11 : i64} {
  func.func @lstm_predictor_kernel(%arg0: memref<64x32xbf16, #tpu.memory_space<vmem>>, %arg1: memref<32x128xbf16, #tpu.memory_space<vmem>>, %arg2: memref<32x128xbf16, #tpu.memory_space<vmem>>, %arg3: memref<1x128xf32, #tpu.memory_space<vmem>>, %arg4: memref<1x32x128xbf16, #tpu.memory_space<vmem>>, %arg5: memref<1x32x128xbf16, #tpu.memory_space<vmem>>, %arg6: memref<1x1x128xf32, #tpu.memory_space<vmem>>, %arg7: memref<32x128xbf16, #tpu.memory_space<vmem>>, %arg8: memref<1x128xf32, #tpu.memory_space<vmem>>, %arg9: memref<8x128xf32, #tpu.memory_space<vmem>>, %arg10: memref<64x128xf32, #tpu.memory_space<vmem>>) attributes {dimension_semantics = [], scalar_prefetch = 0 : i64, scratch_operands = 1 : i64, tpu.core_type = #tpu.core_type<tc>} {
    %c0 = arith.constant 0 : index
    %c0_0 = arith.constant 0 : index
    %0 = vector.load %arg0[%c0, %c0_0] : memref<64x32xbf16, #tpu.memory_space<vmem>>, vector<64x32xbf16>
    %c0_1 = arith.constant 0 : index
    %c0_2 = arith.constant 0 : index
    %1 = vector.load %arg1[%c0_1, %c0_2] : memref<32x128xbf16, #tpu.memory_space<vmem>>, vector<32x128xbf16>
    %cst = arith.constant dense<0.000000e+00> : vector<64x128xf32>
    %2 = tpu.matmul %0, %1, %cst {dimension_numbers = #tpu.dot_dimension_numbers<[1], [0], [0], [1], [0, 0, 1, 1], [], []>} : vector<64x32xbf16>, vector<32x128xbf16>, vector<64x128xf32> -> vector<64x128xf32>
    %c0_3 = arith.constant 0 : index
    %c0_4 = arith.constant 0 : index
    %3 = vector.load %arg3[%c0_3, %c0_4] : memref<1x128xf32, #tpu.memory_space<vmem>>, vector<1x128xf32>
    %4 = vector.broadcast %3 : vector<1x128xf32> to vector<64x128xf32>
    %5 = arith.addf %2, %4 : vector<64x128xf32>
    %c0_5 = arith.constant 0 : index
    %c0_6 = arith.constant 0 : index
    %6 = vector.load %arg10[%c0_5, %c0_6] : memref<64x128xf32, #tpu.memory_space<vmem>>, vector<64x128xf32>
    tpu.vector_store %arg10[%c0_5, %c0_6], %5 {strides = array<i32>} : memref<64x128xf32, #tpu.memory_space<vmem>>, vector<64x128xf32>,
    %c0_7 = arith.constant 0 : index
    %c0_8 = arith.constant 0 : index
    %7 = vector.load %arg2[%c0_7, %c0_8] : memref<32x128xbf16, #tpu.memory_space<vmem>>, vector<32x128xbf16>
    %c0_9 = arith.constant 0 : index
    %c0_10 = arith.constant 0 : index
    %c0_11 = arith.constant 0 : index
    %8 = vector.load %arg4[%c0_9, %c0_10, %c0_11] : memref<1x32x128xbf16, #tpu.memory_space<vmem>>, vector<1x32x128xbf16>
    %9 = vector.shape_cast %8 : vector<1x32x128xbf16> to vector<32x128xbf16>
    %c0_12 = arith.constant 0 : index
    %c0_13 = arith.constant 0 : index
    %c0_14 = arith.constant 0 : index
    %10 = vector.load %arg5[%c0_12, %c0_13, %c0_14] : memref<1x32x128xbf16, #tpu.memory_space<vmem>>, vector<1x32x128xbf16>
    %11 = vector.shape_cast %10 : vector<1x32x128xbf16> to vector<32x128xbf16>
    %c0_15 = arith.constant 0 : index
    %c0_16 = arith.constant 0 : index
    %c0_17 = arith.constant 0 : index
    %12 = vector.load %arg6[%c0_15, %c0_16, %c0_17] : memref<1x1x128xf32, #tpu.memory_space<vmem>>, vector<1x1x128xf32>
    %13 = vector.shape_cast %12 : vector<1x1x128xf32> to vector<1x128xf32>
    %14 = vector.shape_cast %13 : vector<1x128xf32> to vector<1x128xf32>
    %15 = vector.broadcast %14 : vector<1x128xf32> to vector<8x128xf32>
    %cst_18 = arith.constant 0.000000e+00 : f32
    %16 = vector.broadcast %cst_18 : f32 to vector<8x32xf32>
    %cst_19 = arith.constant 0.000000e+00 : f32
    %17 = vector.broadcast %cst_19 : f32 to vector<8x32xf32>
    %cst_20 = arith.constant 0.000000e+00 : f32
    %18 = vector.broadcast %cst_20 : f32 to vector<8x32xf32>
    %cst_21 = arith.constant 0.000000e+00 : f32
    %19 = vector.broadcast %cst_21 : f32 to vector<8x32xf32>
    %c0_22 = arith.constant 0 : index
    %c0_23 = arith.constant 0 : index
    %20 = vector.load %arg10[%c0_22, %c0_23] : memref<64x128xf32, #tpu.memory_space<vmem>>, vector<8x128xf32>
    %21 = arith.truncf %16 : vector<8x32xf32> to vector<8x32xbf16>
    %cst_24 = arith.constant dense<0.000000e+00> : vector<8x128xf32>
    %22 = tpu.matmul %21, %7, %cst_24 {dimension_numbers = #tpu.dot_dimension_numbers<[1], [0], [0], [1], [0, 0, 1, 1], [], []>} : vector<8x32xbf16>, vector<32x128xbf16>, vector<8x128xf32> -> vector<8x128xf32>
    %23 = arith.addf %20, %22 : vector<8x128xf32>
    %24 = arith.negf %23 : vector<8x128xf32>
    %25 = math.exp %24 : vector<8x128xf32>
    %cst_25 = arith.constant 1.000000e+00 : f32
    %26 = vector.broadcast %cst_25 : f32 to vector<8x128xf32>
    %27 = arith.addf %26, %25 : vector<8x128xf32>
    %28 = arith.divf %26, %27 : vector<8x128xf32>
    %29 = vector.extract_strided_slice %28 {offsets = [0, 0], sizes = [8, 32], strides = [1, 1]} : vector<8x128xf32> to vector<8x32xf32>
    %30 = vector.extract_strided_slice %28 {offsets = [0, 32], sizes = [8, 32], strides = [1, 1]} : vector<8x128xf32> to vector<8x32xf32>
    %31 = vector.extract_strided_slice %28 {offsets = [0, 64], sizes = [8, 32], strides = [1, 1]} : vector<8x128xf32> to vector<8x32xf32>
    %cst_26 = arith.constant 2.000000e+00 : f32
    %32 = vector.broadcast %cst_26 : f32 to vector<8x32xf32>
    %33 = arith.mulf %32, %31 : vector<8x32xf32>
    %cst_27 = arith.constant 1.000000e+00 : f32
    %34 = vector.broadcast %cst_27 : f32 to vector<8x32xf32>
    %35 = arith.subf %33, %34 : vector<8x32xf32>
    %36 = vector.extract_strided_slice %28 {offsets = [0, 96], sizes = [8, 32], strides = [1, 1]} : vector<8x128xf32> to vector<8x32xf32>
    %37 = arith.mulf %30, %18 : vector<8x32xf32>
    %38 = arith.mulf %29, %35 : vector<8x32xf32>
    %39 = arith.addf %37, %38 : vector<8x32xf32>
    %40 = math.tanh %39 : vector<8x32xf32>
    %41 = arith.mulf %36, %40 : vector<8x32xf32>
    %42 = arith.truncf %41 : vector<8x32xf32> to vector<8x32xbf16>
    %cst_28 = arith.constant dense<0.000000e+00> : vector<8x128xf32>
    %43 = tpu.matmul %42, %9, %cst_28 {dimension_numbers = #tpu.dot_dimension_numbers<[1], [0], [0], [1], [0, 0, 1, 1], [], []>} : vector<8x32xbf16>, vector<32x128xbf16>, vector<8x128xf32> -> vector<8x128xf32>
    %44 = arith.addf %15, %43 : vector<8x128xf32>
    %45 = arith.truncf %17 : vector<8x32xf32> to vector<8x32xbf16>
    %cst_29 = arith.constant dense<0.000000e+00> : vector<8x128xf32>
    %46 = tpu.matmul %45, %11, %cst_29 {dimension_numbers = #tpu.dot_dimension_numbers<[1], [0], [0], [1], [0, 0, 1, 1], [], []>} : vector<8x32xbf16>, vector<32x128xbf16>, vector<8x128xf32> -> vector<8x128xf32>
    %47 = arith.addf %44, %46 : vector<8x128xf32>
    %48 = arith.negf %47 : vector<8x128xf32>
    %49 = math.exp %48 : vector<8x128xf32>
    %cst_30 = arith.constant 1.000000e+00 : f32
    %50 = vector.broadcast %cst_30 : f32 to vector<8x128xf32>
    %51 = arith.addf %50, %49 : vector<8x128xf32>
    %52 = arith.divf %50, %51 : vector<8x128xf32>
    %53 = vector.extract_strided_slice %52 {offsets = [0, 0], sizes = [8, 32], strides = [1, 1]} : vector<8x128xf32> to vector<8x32xf32>
    %54 = vector.extract_strided_slice %52 {offsets = [0, 32], sizes = [8, 32], strides = [1, 1]} : vector<8x128xf32> to vector<8x32xf32>
    %55 = vector.extract_strided_slice %52 {offsets = [0, 64], sizes = [8, 32], strides = [1, 1]} : vector<8x128xf32> to vector<8x32xf32>
    %cst_31 = arith.constant 2.000000e+00 : f32
    %56 = vector.broadcast %cst_31 : f32 to vector<8x32xf32>
    %57 = arith.mulf %56, %55 : vector<8x32xf32>
    %cst_32 = arith.constant 1.000000e+00 : f32
    %58 = vector.broadcast %cst_32 : f32 to vector<8x32xf32>
    %59 = arith.subf %57, %58 : vector<8x32xf32>
    %60 = vector.extract_strided_slice %52 {offsets = [0, 96], sizes = [8, 32], strides = [1, 1]} : vector<8x128xf32> to vector<8x32xf32>
    %61 = arith.mulf %54, %19 : vector<8x32xf32>
    %62 = arith.mulf %53, %59 : vector<8x32xf32>
    %63 = arith.addf %61, %62 : vector<8x32xf32>
    %64 = math.tanh %63 : vector<8x32xf32>
    %65 = arith.mulf %60, %64 : vector<8x32xf32>
    %c8 = arith.constant 8 : index
    %c0_33 = arith.constant 0 : index
    %66 = vector.load %arg10[%c8, %c0_33] : memref<64x128xf32, #tpu.memory_space<vmem>>, vector<8x128xf32>
    %67 = arith.truncf %41 : vector<8x32xf32> to vector<8x32xbf16>
    %cst_34 = arith.constant dense<0.000000e+00> : vector<8x128xf32>
    %68 = tpu.matmul %67, %7, %cst_34 {dimension_numbers = #tpu.dot_dimension_numbers<[1], [0], [0], [1], [0, 0, 1, 1], [], []>} : vector<8x32xbf16>, vector<32x128xbf16>, vector<8x128xf32> -> vector<8x128xf32>
    %69 = arith.addf %66, %68 : vector<8x128xf32>
    %70 = arith.negf %69 : vector<8x128xf32>
    %71 = math.exp %70 : vector<8x128xf32>
    %cst_35 = arith.constant 1.000000e+00 : f32
    %72 = vector.broadcast %cst_35 : f32 to vector<8x128xf32>
    %73 = arith.addf %72, %71 : vector<8x128xf32>
    %74 = arith.divf %72, %73 : vector<8x128xf32>
    %75 = vector.extract_strided_slice %74 {offsets = [0, 0], sizes = [8, 32], strides = [1, 1]} : vector<8x128xf32> to vector<8x32xf32>
    %76 = vector.extract_strided_slice %74 {offsets = [0, 32], sizes = [8, 32], strides = [1, 1]} : vector<8x128xf32> to vector<8x32xf32>
    %77 = vector.extract_strided_slice %74 {offsets = [0, 64], sizes = [8, 32], strides = [1, 1]} : vector<8x128xf32> to vector<8x32xf32>
    %cst_36 = arith.constant 2.000000e+00 : f32
    %78 = vector.broadcast %cst_36 : f32 to vector<8x32xf32>
    %79 = arith.mulf %78, %77 : vector<8x32xf32>
    %cst_37 = arith.constant 1.000000e+00 : f32
    %80 = vector.broadcast %cst_37 : f32 to vector<8x32xf32>
    %81 = arith.subf %79, %80 : vector<8x32xf32>
    %82 = vector.extract_strided_slice %74 {offsets = [0, 96], sizes = [8, 32], strides = [1, 1]} : vector<8x128xf32> to vector<8x32xf32>
    %83 = arith.mulf %76, %39 : vector<8x32xf32>
    %84 = arith.mulf %75, %81 : vector<8x32xf32>
    %85 = arith.addf %83, %84 : vector<8x32xf32>
    %86 = math.tanh %85 : vector<8x32xf32>
    %87 = arith.mulf %82, %86 : vector<8x32xf32>
    %88 = arith.truncf %87 : vector<8x32xf32> to vector<8x32xbf16>
    %cst_38 = arith.constant dense<0.000000e+00> : vector<8x128xf32>
    %89 = tpu.matmul %88, %9, %cst_38 {dimension_numbers = #tpu.dot_dimension_numbers<[1], [0], [0], [1], [0, 0, 1, 1], [], []>} : vector<8x32xbf16>, vector<32x128xbf16>, vector<8x128xf32> -> vector<8x128xf32>
    %90 = arith.addf %15, %89 : vector<8x128xf32>
    %91 = arith.truncf %65 : vector<8x32xf32> to vector<8x32xbf16>
    %cst_39 = arith.constant dense<0.000000e+00> : vector<8x128xf32>
    %92 = tpu.matmul %91, %11, %cst_39 {dimension_numbers = #tpu.dot_dimension_numbers<[1], [0], [0], [1], [0, 0, 1, 1], [], []>} : vector<8x32xbf16>, vector<32x128xbf16>, vector<8x128xf32> -> vector<8x128xf32>
    %93 = arith.addf %90, %92 : vector<8x128xf32>
    %94 = arith.negf %93 : vector<8x128xf32>
    %95 = math.exp %94 : vector<8x128xf32>
    %cst_40 = arith.constant 1.000000e+00 : f32
    %96 = vector.broadcast %cst_40 : f32 to vector<8x128xf32>
    %97 = arith.addf %96, %95 : vector<8x128xf32>
    %98 = arith.divf %96, %97 : vector<8x128xf32>
    %99 = vector.extract_strided_slice %98 {offsets = [0, 0], sizes = [8, 32], strides = [1, 1]} : vector<8x128xf32> to vector<8x32xf32>
    %100 = vector.extract_strided_slice %98 {offsets = [0, 32], sizes = [8, 32], strides = [1, 1]} : vector<8x128xf32> to vector<8x32xf32>
    %101 = vector.extract_strided_slice %98 {offsets = [0, 64], sizes = [8, 32], strides = [1, 1]} : vector<8x128xf32> to vector<8x32xf32>
    %cst_41 = arith.constant 2.000000e+00 : f32
    %102 = vector.broadcast %cst_41 : f32 to vector<8x32xf32>
    %103 = arith.mulf %102, %101 : vector<8x32xf32>
    %cst_42 = arith.constant 1.000000e+00 : f32
    %104 = vector.broadcast %cst_42 : f32 to vector<8x32xf32>
    %105 = arith.subf %103, %104 : vector<8x32xf32>
    %106 = vector.extract_strided_slice %98 {offsets = [0, 96], sizes = [8, 32], strides = [1, 1]} : vector<8x128xf32> to vector<8x32xf32>
    %107 = arith.mulf %100, %63 : vector<8x32xf32>
    %108 = arith.mulf %99, %105 : vector<8x32xf32>
    %109 = arith.addf %107, %108 : vector<8x32xf32>
    %110 = math.tanh %109 : vector<8x32xf32>
    %111 = arith.mulf %106, %110 : vector<8x32xf32>
    %c16 = arith.constant 16 : index
    %c0_43 = arith.constant 0 : index
    %112 = vector.load %arg10[%c16, %c0_43] : memref<64x128xf32, #tpu.memory_space<vmem>>, vector<8x128xf32>
    %113 = arith.truncf %87 : vector<8x32xf32> to vector<8x32xbf16>
    %cst_44 = arith.constant dense<0.000000e+00> : vector<8x128xf32>
    %114 = tpu.matmul %113, %7, %cst_44 {dimension_numbers = #tpu.dot_dimension_numbers<[1], [0], [0], [1], [0, 0, 1, 1], [], []>} : vector<8x32xbf16>, vector<32x128xbf16>, vector<8x128xf32> -> vector<8x128xf32>
    %115 = arith.addf %112, %114 : vector<8x128xf32>
    %116 = arith.negf %115 : vector<8x128xf32>
    %117 = math.exp %116 : vector<8x128xf32>
    %cst_45 = arith.constant 1.000000e+00 : f32
    %118 = vector.broadcast %cst_45 : f32 to vector<8x128xf32>
    %119 = arith.addf %118, %117 : vector<8x128xf32>
    %120 = arith.divf %118, %119 : vector<8x128xf32>
    %121 = vector.extract_strided_slice %120 {offsets = [0, 0], sizes = [8, 32], strides = [1, 1]} : vector<8x128xf32> to vector<8x32xf32>
    %122 = vector.extract_strided_slice %120 {offsets = [0, 32], sizes = [8, 32], strides = [1, 1]} : vector<8x128xf32> to vector<8x32xf32>
    %123 = vector.extract_strided_slice %120 {offsets = [0, 64], sizes = [8, 32], strides = [1, 1]} : vector<8x128xf32> to vector<8x32xf32>
    %cst_46 = arith.constant 2.000000e+00 : f32
    %124 = vector.broadcast %cst_46 : f32 to vector<8x32xf32>
    %125 = arith.mulf %124, %123 : vector<8x32xf32>
    %cst_47 = arith.constant 1.000000e+00 : f32
    %126 = vector.broadcast %cst_47 : f32 to vector<8x32xf32>
    %127 = arith.subf %125, %126 : vector<8x32xf32>
    %128 = vector.extract_strided_slice %120 {offsets = [0, 96], sizes = [8, 32], strides = [1, 1]} : vector<8x128xf32> to vector<8x32xf32>
    %129 = arith.mulf %122, %85 : vector<8x32xf32>
    %130 = arith.mulf %121, %127 : vector<8x32xf32>
    %131 = arith.addf %129, %130 : vector<8x32xf32>
    %132 = math.tanh %131 : vector<8x32xf32>
    %133 = arith.mulf %128, %132 : vector<8x32xf32>
    %134 = arith.truncf %133 : vector<8x32xf32> to vector<8x32xbf16>
    %cst_48 = arith.constant dense<0.000000e+00> : vector<8x128xf32>
    %135 = tpu.matmul %134, %9, %cst_48 {dimension_numbers = #tpu.dot_dimension_numbers<[1], [0], [0], [1], [0, 0, 1, 1], [], []>} : vector<8x32xbf16>, vector<32x128xbf16>, vector<8x128xf32> -> vector<8x128xf32>
    %136 = arith.addf %15, %135 : vector<8x128xf32>
    %137 = arith.truncf %111 : vector<8x32xf32> to vector<8x32xbf16>
    %cst_49 = arith.constant dense<0.000000e+00> : vector<8x128xf32>
    %138 = tpu.matmul %137, %11, %cst_49 {dimension_numbers = #tpu.dot_dimension_numbers<[1], [0], [0], [1], [0, 0, 1, 1], [], []>} : vector<8x32xbf16>, vector<32x128xbf16>, vector<8x128xf32> -> vector<8x128xf32>
    %139 = arith.addf %136, %138 : vector<8x128xf32>
    %140 = arith.negf %139 : vector<8x128xf32>
    %141 = math.exp %140 : vector<8x128xf32>
    %cst_50 = arith.constant 1.000000e+00 : f32
    %142 = vector.broadcast %cst_50 : f32 to vector<8x128xf32>
    %143 = arith.addf %142, %141 : vector<8x128xf32>
    %144 = arith.divf %142, %143 : vector<8x128xf32>
    %145 = vector.extract_strided_slice %144 {offsets = [0, 0], sizes = [8, 32], strides = [1, 1]} : vector<8x128xf32> to vector<8x32xf32>
    %146 = vector.extract_strided_slice %144 {offsets = [0, 32], sizes = [8, 32], strides = [1, 1]} : vector<8x128xf32> to vector<8x32xf32>
    %147 = vector.extract_strided_slice %144 {offsets = [0, 64], sizes = [8, 32], strides = [1, 1]} : vector<8x128xf32> to vector<8x32xf32>
    %cst_51 = arith.constant 2.000000e+00 : f32
    %148 = vector.broadcast %cst_51 : f32 to vector<8x32xf32>
    %149 = arith.mulf %148, %147 : vector<8x32xf32>
    %cst_52 = arith.constant 1.000000e+00 : f32
    %150 = vector.broadcast %cst_52 : f32 to vector<8x32xf32>
    %151 = arith.subf %149, %150 : vector<8x32xf32>
    %152 = vector.extract_strided_slice %144 {offsets = [0, 96], sizes = [8, 32], strides = [1, 1]} : vector<8x128xf32> to vector<8x32xf32>
    %153 = arith.mulf %146, %109 : vector<8x32xf32>
    %154 = arith.mulf %145, %151 : vector<8x32xf32>
    %155 = arith.addf %153, %154 : vector<8x32xf32>
    %156 = math.tanh %155 : vector<8x32xf32>
    %157 = arith.mulf %152, %156 : vector<8x32xf32>
    %c24 = arith.constant 24 : index
    %c0_53 = arith.constant 0 : index
    %158 = vector.load %arg10[%c24, %c0_53] : memref<64x128xf32, #tpu.memory_space<vmem>>, vector<8x128xf32>
    %159 = arith.truncf %133 : vector<8x32xf32> to vector<8x32xbf16>
    %cst_54 = arith.constant dense<0.000000e+00> : vector<8x128xf32>
    %160 = tpu.matmul %159, %7, %cst_54 {dimension_numbers = #tpu.dot_dimension_numbers<[1], [0], [0], [1], [0, 0, 1, 1], [], []>} : vector<8x32xbf16>, vector<32x128xbf16>, vector<8x128xf32> -> vector<8x128xf32>
    %161 = arith.addf %158, %160 : vector<8x128xf32>
    %162 = arith.negf %161 : vector<8x128xf32>
    %163 = math.exp %162 : vector<8x128xf32>
    %cst_55 = arith.constant 1.000000e+00 : f32
    %164 = vector.broadcast %cst_55 : f32 to vector<8x128xf32>
    %165 = arith.addf %164, %163 : vector<8x128xf32>
    %166 = arith.divf %164, %165 : vector<8x128xf32>
    %167 = vector.extract_strided_slice %166 {offsets = [0, 0], sizes = [8, 32], strides = [1, 1]} : vector<8x128xf32> to vector<8x32xf32>
    %168 = vector.extract_strided_slice %166 {offsets = [0, 32], sizes = [8, 32], strides = [1, 1]} : vector<8x128xf32> to vector<8x32xf32>
    %169 = vector.extract_strided_slice %166 {offsets = [0, 64], sizes = [8, 32], strides = [1, 1]} : vector<8x128xf32> to vector<8x32xf32>
    %cst_56 = arith.constant 2.000000e+00 : f32
    %170 = vector.broadcast %cst_56 : f32 to vector<8x32xf32>
    %171 = arith.mulf %170, %169 : vector<8x32xf32>
    %cst_57 = arith.constant 1.000000e+00 : f32
    %172 = vector.broadcast %cst_57 : f32 to vector<8x32xf32>
    %173 = arith.subf %171, %172 : vector<8x32xf32>
    %174 = vector.extract_strided_slice %166 {offsets = [0, 96], sizes = [8, 32], strides = [1, 1]} : vector<8x128xf32> to vector<8x32xf32>
    %175 = arith.mulf %168, %131 : vector<8x32xf32>
    %176 = arith.mulf %167, %173 : vector<8x32xf32>
    %177 = arith.addf %175, %176 : vector<8x32xf32>
    %178 = math.tanh %177 : vector<8x32xf32>
    %179 = arith.mulf %174, %178 : vector<8x32xf32>
    %180 = arith.truncf %179 : vector<8x32xf32> to vector<8x32xbf16>
    %cst_58 = arith.constant dense<0.000000e+00> : vector<8x128xf32>
    %181 = tpu.matmul %180, %9, %cst_58 {dimension_numbers = #tpu.dot_dimension_numbers<[1], [0], [0], [1], [0, 0, 1, 1], [], []>} : vector<8x32xbf16>, vector<32x128xbf16>, vector<8x128xf32> -> vector<8x128xf32>
    %182 = arith.addf %15, %181 : vector<8x128xf32>
    %183 = arith.truncf %157 : vector<8x32xf32> to vector<8x32xbf16>
    %cst_59 = arith.constant dense<0.000000e+00> : vector<8x128xf32>
    %184 = tpu.matmul %183, %11, %cst_59 {dimension_numbers = #tpu.dot_dimension_numbers<[1], [0], [0], [1], [0, 0, 1, 1], [], []>} : vector<8x32xbf16>, vector<32x128xbf16>, vector<8x128xf32> -> vector<8x128xf32>
    %185 = arith.addf %182, %184 : vector<8x128xf32>
    %186 = arith.negf %185 : vector<8x128xf32>
    %187 = math.exp %186 : vector<8x128xf32>
    %cst_60 = arith.constant 1.000000e+00 : f32
    %188 = vector.broadcast %cst_60 : f32 to vector<8x128xf32>
    %189 = arith.addf %188, %187 : vector<8x128xf32>
    %190 = arith.divf %188, %189 : vector<8x128xf32>
    %191 = vector.extract_strided_slice %190 {offsets = [0, 0], sizes = [8, 32], strides = [1, 1]} : vector<8x128xf32> to vector<8x32xf32>
    %192 = vector.extract_strided_slice %190 {offsets = [0, 32], sizes = [8, 32], strides = [1, 1]} : vector<8x128xf32> to vector<8x32xf32>
    %193 = vector.extract_strided_slice %190 {offsets = [0, 64], sizes = [8, 32], strides = [1, 1]} : vector<8x128xf32> to vector<8x32xf32>
    %cst_61 = arith.constant 2.000000e+00 : f32
    %194 = vector.broadcast %cst_61 : f32 to vector<8x32xf32>
    %195 = arith.mulf %194, %193 : vector<8x32xf32>
    %cst_62 = arith.constant 1.000000e+00 : f32
    %196 = vector.broadcast %cst_62 : f32 to vector<8x32xf32>
    %197 = arith.subf %195, %196 : vector<8x32xf32>
    %198 = vector.extract_strided_slice %190 {offsets = [0, 96], sizes = [8, 32], strides = [1, 1]} : vector<8x128xf32> to vector<8x32xf32>
    %199 = arith.mulf %192, %155 : vector<8x32xf32>
    %200 = arith.mulf %191, %197 : vector<8x32xf32>
    %201 = arith.addf %199, %200 : vector<8x32xf32>
    %202 = math.tanh %201 : vector<8x32xf32>
    %203 = arith.mulf %198, %202 : vector<8x32xf32>
    %c32 = arith.constant 32 : index
    %c0_63 = arith.constant 0 : index
    %204 = vector.load %arg10[%c32, %c0_63] : memref<64x128xf32, #tpu.memory_space<vmem>>, vector<8x128xf32>
    %205 = arith.truncf %179 : vector<8x32xf32> to vector<8x32xbf16>
    %cst_64 = arith.constant dense<0.000000e+00> : vector<8x128xf32>
    %206 = tpu.matmul %205, %7, %cst_64 {dimension_numbers = #tpu.dot_dimension_numbers<[1], [0], [0], [1], [0, 0, 1, 1], [], []>} : vector<8x32xbf16>, vector<32x128xbf16>, vector<8x128xf32> -> vector<8x128xf32>
    %207 = arith.addf %204, %206 : vector<8x128xf32>
    %208 = arith.negf %207 : vector<8x128xf32>
    %209 = math.exp %208 : vector<8x128xf32>
    %cst_65 = arith.constant 1.000000e+00 : f32
    %210 = vector.broadcast %cst_65 : f32 to vector<8x128xf32>
    %211 = arith.addf %210, %209 : vector<8x128xf32>
    %212 = arith.divf %210, %211 : vector<8x128xf32>
    %213 = vector.extract_strided_slice %212 {offsets = [0, 0], sizes = [8, 32], strides = [1, 1]} : vector<8x128xf32> to vector<8x32xf32>
    %214 = vector.extract_strided_slice %212 {offsets = [0, 32], sizes = [8, 32], strides = [1, 1]} : vector<8x128xf32> to vector<8x32xf32>
    %215 = vector.extract_strided_slice %212 {offsets = [0, 64], sizes = [8, 32], strides = [1, 1]} : vector<8x128xf32> to vector<8x32xf32>
    %cst_66 = arith.constant 2.000000e+00 : f32
    %216 = vector.broadcast %cst_66 : f32 to vector<8x32xf32>
    %217 = arith.mulf %216, %215 : vector<8x32xf32>
    %cst_67 = arith.constant 1.000000e+00 : f32
    %218 = vector.broadcast %cst_67 : f32 to vector<8x32xf32>
    %219 = arith.subf %217, %218 : vector<8x32xf32>
    %220 = vector.extract_strided_slice %212 {offsets = [0, 96], sizes = [8, 32], strides = [1, 1]} : vector<8x128xf32> to vector<8x32xf32>
    %221 = arith.mulf %214, %177 : vector<8x32xf32>
    %222 = arith.mulf %213, %219 : vector<8x32xf32>
    %223 = arith.addf %221, %222 : vector<8x32xf32>
    %224 = math.tanh %223 : vector<8x32xf32>
    %225 = arith.mulf %220, %224 : vector<8x32xf32>
    %226 = arith.truncf %225 : vector<8x32xf32> to vector<8x32xbf16>
    %cst_68 = arith.constant dense<0.000000e+00> : vector<8x128xf32>
    %227 = tpu.matmul %226, %9, %cst_68 {dimension_numbers = #tpu.dot_dimension_numbers<[1], [0], [0], [1], [0, 0, 1, 1], [], []>} : vector<8x32xbf16>, vector<32x128xbf16>, vector<8x128xf32> -> vector<8x128xf32>
    %228 = arith.addf %15, %227 : vector<8x128xf32>
    %229 = arith.truncf %203 : vector<8x32xf32> to vector<8x32xbf16>
    %cst_69 = arith.constant dense<0.000000e+00> : vector<8x128xf32>
    %230 = tpu.matmul %229, %11, %cst_69 {dimension_numbers = #tpu.dot_dimension_numbers<[1], [0], [0], [1], [0, 0, 1, 1], [], []>} : vector<8x32xbf16>, vector<32x128xbf16>, vector<8x128xf32> -> vector<8x128xf32>
    %231 = arith.addf %228, %230 : vector<8x128xf32>
    %232 = arith.negf %231 : vector<8x128xf32>
    %233 = math.exp %232 : vector<8x128xf32>
    %cst_70 = arith.constant 1.000000e+00 : f32
    %234 = vector.broadcast %cst_70 : f32 to vector<8x128xf32>
    %235 = arith.addf %234, %233 : vector<8x128xf32>
    %236 = arith.divf %234, %235 : vector<8x128xf32>
    %237 = vector.extract_strided_slice %236 {offsets = [0, 0], sizes = [8, 32], strides = [1, 1]} : vector<8x128xf32> to vector<8x32xf32>
    %238 = vector.extract_strided_slice %236 {offsets = [0, 32], sizes = [8, 32], strides = [1, 1]} : vector<8x128xf32> to vector<8x32xf32>
    %239 = vector.extract_strided_slice %236 {offsets = [0, 64], sizes = [8, 32], strides = [1, 1]} : vector<8x128xf32> to vector<8x32xf32>
    %cst_71 = arith.constant 2.000000e+00 : f32
    %240 = vector.broadcast %cst_71 : f32 to vector<8x32xf32>
    %241 = arith.mulf %240, %239 : vector<8x32xf32>
    %cst_72 = arith.constant 1.000000e+00 : f32
    %242 = vector.broadcast %cst_72 : f32 to vector<8x32xf32>
    %243 = arith.subf %241, %242 : vector<8x32xf32>
    %244 = vector.extract_strided_slice %236 {offsets = [0, 96], sizes = [8, 32], strides = [1, 1]} : vector<8x128xf32> to vector<8x32xf32>
    %245 = arith.mulf %238, %201 : vector<8x32xf32>
    %246 = arith.mulf %237, %243 : vector<8x32xf32>
    %247 = arith.addf %245, %246 : vector<8x32xf32>
    %248 = math.tanh %247 : vector<8x32xf32>
    %249 = arith.mulf %244, %248 : vector<8x32xf32>
    %c40 = arith.constant 40 : index
    %c0_73 = arith.constant 0 : index
    %250 = vector.load %arg10[%c40, %c0_73] : memref<64x128xf32, #tpu.memory_space<vmem>>, vector<8x128xf32>
    %251 = arith.truncf %225 : vector<8x32xf32> to vector<8x32xbf16>
    %cst_74 = arith.constant dense<0.000000e+00> : vector<8x128xf32>
    %252 = tpu.matmul %251, %7, %cst_74 {dimension_numbers = #tpu.dot_dimension_numbers<[1], [0], [0], [1], [0, 0, 1, 1], [], []>} : vector<8x32xbf16>, vector<32x128xbf16>, vector<8x128xf32> -> vector<8x128xf32>
    %253 = arith.addf %250, %252 : vector<8x128xf32>
    %254 = arith.negf %253 : vector<8x128xf32>
    %255 = math.exp %254 : vector<8x128xf32>
    %cst_75 = arith.constant 1.000000e+00 : f32
    %256 = vector.broadcast %cst_75 : f32 to vector<8x128xf32>
    %257 = arith.addf %256, %255 : vector<8x128xf32>
    %258 = arith.divf %256, %257 : vector<8x128xf32>
    %259 = vector.extract_strided_slice %258 {offsets = [0, 0], sizes = [8, 32], strides = [1, 1]} : vector<8x128xf32> to vector<8x32xf32>
    %260 = vector.extract_strided_slice %258 {offsets = [0, 32], sizes = [8, 32], strides = [1, 1]} : vector<8x128xf32> to vector<8x32xf32>
    %261 = vector.extract_strided_slice %258 {offsets = [0, 64], sizes = [8, 32], strides = [1, 1]} : vector<8x128xf32> to vector<8x32xf32>
    %cst_76 = arith.constant 2.000000e+00 : f32
    %262 = vector.broadcast %cst_76 : f32 to vector<8x32xf32>
    %263 = arith.mulf %262, %261 : vector<8x32xf32>
    %cst_77 = arith.constant 1.000000e+00 : f32
    %264 = vector.broadcast %cst_77 : f32 to vector<8x32xf32>
    %265 = arith.subf %263, %264 : vector<8x32xf32>
    %266 = vector.extract_strided_slice %258 {offsets = [0, 96], sizes = [8, 32], strides = [1, 1]} : vector<8x128xf32> to vector<8x32xf32>
    %267 = arith.mulf %260, %223 : vector<8x32xf32>
    %268 = arith.mulf %259, %265 : vector<8x32xf32>
    %269 = arith.addf %267, %268 : vector<8x32xf32>
    %270 = math.tanh %269 : vector<8x32xf32>
    %271 = arith.mulf %266, %270 : vector<8x32xf32>
    %272 = arith.truncf %271 : vector<8x32xf32> to vector<8x32xbf16>
    %cst_78 = arith.constant dense<0.000000e+00> : vector<8x128xf32>
    %273 = tpu.matmul %272, %9, %cst_78 {dimension_numbers = #tpu.dot_dimension_numbers<[1], [0], [0], [1], [0, 0, 1, 1], [], []>} : vector<8x32xbf16>, vector<32x128xbf16>, vector<8x128xf32> -> vector<8x128xf32>
    %274 = arith.addf %15, %273 : vector<8x128xf32>
    %275 = arith.truncf %249 : vector<8x32xf32> to vector<8x32xbf16>
    %cst_79 = arith.constant dense<0.000000e+00> : vector<8x128xf32>
    %276 = tpu.matmul %275, %11, %cst_79 {dimension_numbers = #tpu.dot_dimension_numbers<[1], [0], [0], [1], [0, 0, 1, 1], [], []>} : vector<8x32xbf16>, vector<32x128xbf16>, vector<8x128xf32> -> vector<8x128xf32>
    %277 = arith.addf %274, %276 : vector<8x128xf32>
    %278 = arith.negf %277 : vector<8x128xf32>
    %279 = math.exp %278 : vector<8x128xf32>
    %cst_80 = arith.constant 1.000000e+00 : f32
    %280 = vector.broadcast %cst_80 : f32 to vector<8x128xf32>
    %281 = arith.addf %280, %279 : vector<8x128xf32>
    %282 = arith.divf %280, %281 : vector<8x128xf32>
    %283 = vector.extract_strided_slice %282 {offsets = [0, 0], sizes = [8, 32], strides = [1, 1]} : vector<8x128xf32> to vector<8x32xf32>
    %284 = vector.extract_strided_slice %282 {offsets = [0, 32], sizes = [8, 32], strides = [1, 1]} : vector<8x128xf32> to vector<8x32xf32>
    %285 = vector.extract_strided_slice %282 {offsets = [0, 64], sizes = [8, 32], strides = [1, 1]} : vector<8x128xf32> to vector<8x32xf32>
    %cst_81 = arith.constant 2.000000e+00 : f32
    %286 = vector.broadcast %cst_81 : f32 to vector<8x32xf32>
    %287 = arith.mulf %286, %285 : vector<8x32xf32>
    %cst_82 = arith.constant 1.000000e+00 : f32
    %288 = vector.broadcast %cst_82 : f32 to vector<8x32xf32>
    %289 = arith.subf %287, %288 : vector<8x32xf32>
    %290 = vector.extract_strided_slice %282 {offsets = [0, 96], sizes = [8, 32], strides = [1, 1]} : vector<8x128xf32> to vector<8x32xf32>
    %291 = arith.mulf %284, %247 : vector<8x32xf32>
    %292 = arith.mulf %283, %289 : vector<8x32xf32>
    %293 = arith.addf %291, %292 : vector<8x32xf32>
    %294 = math.tanh %293 : vector<8x32xf32>
    %295 = arith.mulf %290, %294 : vector<8x32xf32>
    %c48 = arith.constant 48 : index
    %c0_83 = arith.constant 0 : index
    %296 = vector.load %arg10[%c48, %c0_83] : memref<64x128xf32, #tpu.memory_space<vmem>>, vector<8x128xf32>
    %297 = arith.truncf %271 : vector<8x32xf32> to vector<8x32xbf16>
    %cst_84 = arith.constant dense<0.000000e+00> : vector<8x128xf32>
    %298 = tpu.matmul %297, %7, %cst_84 {dimension_numbers = #tpu.dot_dimension_numbers<[1], [0], [0], [1], [0, 0, 1, 1], [], []>} : vector<8x32xbf16>, vector<32x128xbf16>, vector<8x128xf32> -> vector<8x128xf32>
    %299 = arith.addf %296, %298 : vector<8x128xf32>
    %300 = arith.negf %299 : vector<8x128xf32>
    %301 = math.exp %300 : vector<8x128xf32>
    %cst_85 = arith.constant 1.000000e+00 : f32
    %302 = vector.broadcast %cst_85 : f32 to vector<8x128xf32>
    %303 = arith.addf %302, %301 : vector<8x128xf32>
    %304 = arith.divf %302, %303 : vector<8x128xf32>
    %305 = vector.extract_strided_slice %304 {offsets = [0, 0], sizes = [8, 32], strides = [1, 1]} : vector<8x128xf32> to vector<8x32xf32>
    %306 = vector.extract_strided_slice %304 {offsets = [0, 32], sizes = [8, 32], strides = [1, 1]} : vector<8x128xf32> to vector<8x32xf32>
    %307 = vector.extract_strided_slice %304 {offsets = [0, 64], sizes = [8, 32], strides = [1, 1]} : vector<8x128xf32> to vector<8x32xf32>
    %cst_86 = arith.constant 2.000000e+00 : f32
    %308 = vector.broadcast %cst_86 : f32 to vector<8x32xf32>
    %309 = arith.mulf %308, %307 : vector<8x32xf32>
    %cst_87 = arith.constant 1.000000e+00 : f32
    %310 = vector.broadcast %cst_87 : f32 to vector<8x32xf32>
    %311 = arith.subf %309, %310 : vector<8x32xf32>
    %312 = vector.extract_strided_slice %304 {offsets = [0, 96], sizes = [8, 32], strides = [1, 1]} : vector<8x128xf32> to vector<8x32xf32>
    %313 = arith.mulf %306, %269 : vector<8x32xf32>
    %314 = arith.mulf %305, %311 : vector<8x32xf32>
    %315 = arith.addf %313, %314 : vector<8x32xf32>
    %316 = math.tanh %315 : vector<8x32xf32>
    %317 = arith.mulf %312, %316 : vector<8x32xf32>
    %318 = arith.truncf %317 : vector<8x32xf32> to vector<8x32xbf16>
    %cst_88 = arith.constant dense<0.000000e+00> : vector<8x128xf32>
    %319 = tpu.matmul %318, %9, %cst_88 {dimension_numbers = #tpu.dot_dimension_numbers<[1], [0], [0], [1], [0, 0, 1, 1], [], []>} : vector<8x32xbf16>, vector<32x128xbf16>, vector<8x128xf32> -> vector<8x128xf32>
    %320 = arith.addf %15, %319 : vector<8x128xf32>
    %321 = arith.truncf %295 : vector<8x32xf32> to vector<8x32xbf16>
    %cst_89 = arith.constant dense<0.000000e+00> : vector<8x128xf32>
    %322 = tpu.matmul %321, %11, %cst_89 {dimension_numbers = #tpu.dot_dimension_numbers<[1], [0], [0], [1], [0, 0, 1, 1], [], []>} : vector<8x32xbf16>, vector<32x128xbf16>, vector<8x128xf32> -> vector<8x128xf32>
    %323 = arith.addf %320, %322 : vector<8x128xf32>
    %324 = arith.negf %323 : vector<8x128xf32>
    %325 = math.exp %324 : vector<8x128xf32>
    %cst_90 = arith.constant 1.000000e+00 : f32
    %326 = vector.broadcast %cst_90 : f32 to vector<8x128xf32>
    %327 = arith.addf %326, %325 : vector<8x128xf32>
    %328 = arith.divf %326, %327 : vector<8x128xf32>
    %329 = vector.extract_strided_slice %328 {offsets = [0, 0], sizes = [8, 32], strides = [1, 1]} : vector<8x128xf32> to vector<8x32xf32>
    %330 = vector.extract_strided_slice %328 {offsets = [0, 32], sizes = [8, 32], strides = [1, 1]} : vector<8x128xf32> to vector<8x32xf32>
    %331 = vector.extract_strided_slice %328 {offsets = [0, 64], sizes = [8, 32], strides = [1, 1]} : vector<8x128xf32> to vector<8x32xf32>
    %cst_91 = arith.constant 2.000000e+00 : f32
    %332 = vector.broadcast %cst_91 : f32 to vector<8x32xf32>
    %333 = arith.mulf %332, %331 : vector<8x32xf32>
    %cst_92 = arith.constant 1.000000e+00 : f32
    %334 = vector.broadcast %cst_92 : f32 to vector<8x32xf32>
    %335 = arith.subf %333, %334 : vector<8x32xf32>
    %336 = vector.extract_strided_slice %328 {offsets = [0, 96], sizes = [8, 32], strides = [1, 1]} : vector<8x128xf32> to vector<8x32xf32>
    %337 = arith.mulf %330, %293 : vector<8x32xf32>
    %338 = arith.mulf %329, %335 : vector<8x32xf32>
    %339 = arith.addf %337, %338 : vector<8x32xf32>
    %340 = math.tanh %339 : vector<8x32xf32>
    %341 = arith.mulf %336, %340 : vector<8x32xf32>
    %c56 = arith.constant 56 : index
    %c0_93 = arith.constant 0 : index
    %342 = vector.load %arg10[%c56, %c0_93] : memref<64x128xf32, #tpu.memory_space<vmem>>, vector<8x128xf32>
    %343 = arith.truncf %317 : vector<8x32xf32> to vector<8x32xbf16>
    %cst_94 = arith.constant dense<0.000000e+00> : vector<8x128xf32>
    %344 = tpu.matmul %343, %7, %cst_94 {dimension_numbers = #tpu.dot_dimension_numbers<[1], [0], [0], [1], [0, 0, 1, 1], [], []>} : vector<8x32xbf16>, vector<32x128xbf16>, vector<8x128xf32> -> vector<8x128xf32>
    %345 = arith.addf %342, %344 : vector<8x128xf32>
    %346 = arith.negf %345 : vector<8x128xf32>
    %347 = math.exp %346 : vector<8x128xf32>
    %cst_95 = arith.constant 1.000000e+00 : f32
    %348 = vector.broadcast %cst_95 : f32 to vector<8x128xf32>
    %349 = arith.addf %348, %347 : vector<8x128xf32>
    %350 = arith.divf %348, %349 : vector<8x128xf32>
    %351 = vector.extract_strided_slice %350 {offsets = [0, 0], sizes = [8, 32], strides = [1, 1]} : vector<8x128xf32> to vector<8x32xf32>
    %352 = vector.extract_strided_slice %350 {offsets = [0, 32], sizes = [8, 32], strides = [1, 1]} : vector<8x128xf32> to vector<8x32xf32>
    %353 = vector.extract_strided_slice %350 {offsets = [0, 64], sizes = [8, 32], strides = [1, 1]} : vector<8x128xf32> to vector<8x32xf32>
    %cst_96 = arith.constant 2.000000e+00 : f32
    %354 = vector.broadcast %cst_96 : f32 to vector<8x32xf32>
    %355 = arith.mulf %354, %353 : vector<8x32xf32>
    %cst_97 = arith.constant 1.000000e+00 : f32
    %356 = vector.broadcast %cst_97 : f32 to vector<8x32xf32>
    %357 = arith.subf %355, %356 : vector<8x32xf32>
    %358 = vector.extract_strided_slice %350 {offsets = [0, 96], sizes = [8, 32], strides = [1, 1]} : vector<8x128xf32> to vector<8x32xf32>
    %359 = arith.mulf %352, %315 : vector<8x32xf32>
    %360 = arith.mulf %351, %357 : vector<8x32xf32>
    %361 = arith.addf %359, %360 : vector<8x32xf32>
    %362 = math.tanh %361 : vector<8x32xf32>
    %363 = arith.mulf %358, %362 : vector<8x32xf32>
    %364 = arith.truncf %363 : vector<8x32xf32> to vector<8x32xbf16>
    %cst_98 = arith.constant dense<0.000000e+00> : vector<8x128xf32>
    %365 = tpu.matmul %364, %9, %cst_98 {dimension_numbers = #tpu.dot_dimension_numbers<[1], [0], [0], [1], [0, 0, 1, 1], [], []>} : vector<8x32xbf16>, vector<32x128xbf16>, vector<8x128xf32> -> vector<8x128xf32>
    %366 = arith.addf %15, %365 : vector<8x128xf32>
    %367 = arith.truncf %341 : vector<8x32xf32> to vector<8x32xbf16>
    %cst_99 = arith.constant dense<0.000000e+00> : vector<8x128xf32>
    %368 = tpu.matmul %367, %11, %cst_99 {dimension_numbers = #tpu.dot_dimension_numbers<[1], [0], [0], [1], [0, 0, 1, 1], [], []>} : vector<8x32xbf16>, vector<32x128xbf16>, vector<8x128xf32> -> vector<8x128xf32>
    %369 = arith.addf %366, %368 : vector<8x128xf32>
    %370 = arith.negf %369 : vector<8x128xf32>
    %371 = math.exp %370 : vector<8x128xf32>
    %cst_100 = arith.constant 1.000000e+00 : f32
    %372 = vector.broadcast %cst_100 : f32 to vector<8x128xf32>
    %373 = arith.addf %372, %371 : vector<8x128xf32>
    %374 = arith.divf %372, %373 : vector<8x128xf32>
    %375 = vector.extract_strided_slice %374 {offsets = [0, 0], sizes = [8, 32], strides = [1, 1]} : vector<8x128xf32> to vector<8x32xf32>
    %376 = vector.extract_strided_slice %374 {offsets = [0, 32], sizes = [8, 32], strides = [1, 1]} : vector<8x128xf32> to vector<8x32xf32>
    %377 = vector.extract_strided_slice %374 {offsets = [0, 64], sizes = [8, 32], strides = [1, 1]} : vector<8x128xf32> to vector<8x32xf32>
    %cst_101 = arith.constant 2.000000e+00 : f32
    %378 = vector.broadcast %cst_101 : f32 to vector<8x32xf32>
    %379 = arith.mulf %378, %377 : vector<8x32xf32>
    %cst_102 = arith.constant 1.000000e+00 : f32
    %380 = vector.broadcast %cst_102 : f32 to vector<8x32xf32>
    %381 = arith.subf %379, %380 : vector<8x32xf32>
    %382 = vector.extract_strided_slice %374 {offsets = [0, 96], sizes = [8, 32], strides = [1, 1]} : vector<8x128xf32> to vector<8x32xf32>
    %383 = arith.mulf %376, %339 : vector<8x32xf32>
    %384 = arith.mulf %375, %381 : vector<8x32xf32>
    %385 = arith.addf %383, %384 : vector<8x32xf32>
    %386 = math.tanh %385 : vector<8x32xf32>
    %387 = arith.mulf %382, %386 : vector<8x32xf32>
    %388 = arith.truncf %387 : vector<8x32xf32> to vector<8x32xbf16>
    %c0_103 = arith.constant 0 : index
    %c0_104 = arith.constant 0 : index
    %389 = vector.load %arg7[%c0_103, %c0_104] : memref<32x128xbf16, #tpu.memory_space<vmem>>, vector<32x128xbf16>
    %cst_105 = arith.constant dense<0.000000e+00> : vector<8x128xf32>
    %390 = tpu.matmul %388, %389, %cst_105 {dimension_numbers = #tpu.dot_dimension_numbers<[1], [0], [0], [1], [0, 0, 1, 1], [], []>} : vector<8x32xbf16>, vector<32x128xbf16>, vector<8x128xf32> -> vector<8x128xf32>
    %c0_106 = arith.constant 0 : index
    %c0_107 = arith.constant 0 : index
    %391 = vector.load %arg8[%c0_106, %c0_107] : memref<1x128xf32, #tpu.memory_space<vmem>>, vector<1x128xf32>
    %392 = vector.broadcast %391 : vector<1x128xf32> to vector<8x128xf32>
    %393 = arith.addf %390, %392 : vector<8x128xf32>
    %394 = arith.negf %393 : vector<8x128xf32>
    %395 = math.exp %394 : vector<8x128xf32>
    %cst_108 = arith.constant 1.000000e+00 : f32
    %396 = vector.broadcast %cst_108 : f32 to vector<8x128xf32>
    %397 = arith.addf %396, %395 : vector<8x128xf32>
    %398 = arith.divf %396, %397 : vector<8x128xf32>
    %c0_109 = arith.constant 0 : index
    %c0_110 = arith.constant 0 : index
    %399 = vector.load %arg9[%c0_109, %c0_110] : memref<8x128xf32, #tpu.memory_space<vmem>>, vector<8x128xf32>
    tpu.vector_store %arg9[%c0_109, %c0_110], %398 {strides = array<i32>} : memref<8x128xf32, #tpu.memory_space<vmem>>, vector<8x128xf32>,
    return
  }
}

</mosaic_0001>

<bundles_post_ra>
// kernel: lstm_predictor_pallas.1
= control target key start
LH: loop header
LB: loop body
LE: loop exit
PB: predicated region body
PF: predicated region fallthrough
CT: control target
= control target key end

     0   :  { %14 = vsyncpa [#allocation4], 0  ;;  %s2015_s0 = inlined_call_operand.vmem [shape: bf16[64,32], index: 0, kind: input, shape index: {}]   ;;  %s2016_s1 = inlined_call_operand.vmem [shape: bf16[32,128], index: 1, kind: input, shape index: {}]   ;;  %s2017_s2 = inlined_call_operand.vmem [shape: bf16[32,128], index: 2, kind: input, shape index: {}]   ;;  %s2018_s3 = inlined_call_operand.hbm [shape: f32[1,128], index: 3, kind: input, shape index: {}]   ;;  %s2019_s4 = inlined_call_operand.vmem [shape: bf16[1,32,128], index: 4, kind: input, shape index: {}]   ;;  %s2020_s5 = inlined_call_operand.vmem [shape: bf16[1,32,128], index: 5, kind: input, shape index: {}]   ;;  %s2021_s6 = inlined_call_operand.vmem [shape: f32[1,1,128], index: 6, kind: input, shape index: {}]   ;;  %s2022_s7 = inlined_call_operand.hbm [shape: bf16[32,128], index: 7, kind: input, shape index: {}]   ;;  %s2023_s8 = inlined_call_operand.hbm [shape: f32[1,128], index: 8, kind: input, shape index: {}]   ;;  %s2024_s9 = inlined_call_operand.vmem [shape: f32[8,128], index: 9, kind: output, shape index: {}]  }
   0x1   :  { %15 = vsyncpa [#allocation6], 0  ;;  %s43_s11 = sshll.u32 %s2022_s7, 4  ;;  %s1670_s12 = smov [#allocation5]   ;;  %s44_s11 = int_to_ptr.hbm [resolvable:$true] %s43_s11 }
   0x2   :  { %s45_s13 = sshll.u32 %s1670_s12, 4  ;;  %s27_s16 = sshll.u32 %s2018_s3, 4  ;;  %s46_s13 = int_to_ptr.vmem [resolvable:$true] %s45_s13  ;;  %s28_s16 = int_to_ptr.hbm [resolvable:$true] %s27_s16 }
   0x3   :  { %s1671_s17 = smov 64   ;;  %s1672_s18 = smov 4  }
   0x4   :  { %51 = dma.hbm_to_vmem [thread:$0]  %s44_s11, 256, %s46_s13, [#allocation6], %s1671_s17, %s1671_s17, %s1672_s18  }
   0x5   :  { %s1673_s19 = smov [#allocation3]   ;;  %s57_s7 = sshll.u32 %s2023_s8, 4  ;;  %s58_s7 = int_to_ptr.hbm [resolvable:$true] %s57_s7 }
   0x6   :  { %s29_s20 = sshll.u32 %s1673_s19, 4  ;;  %s1674_s23 = smov [#allocation7]   ;;  %s30_s20 = int_to_ptr.vmem [resolvable:$true] %s29_s20 }
   0x7   :  { %32 = dma.hbm_to_vmem [thread:$0]  %s28_s16, 16, %s30_s20, [#allocation4]  }
   0x8   :  { %s59_s24 = sshll.u32 %s1674_s23, 4  ;;  %s60_s24 = int_to_ptr.vmem [resolvable:$true] %s59_s24 }
   0x9   :  { %62 = dma.hbm_to_vmem [thread:$0]  %s58_s7, 16, %s60_s24, [#allocation6]  }
   0xa   :  { %1666 = dma.done.wait [#allocation4], 16  }
   0xb   :  { %1667 = vsyncadd [#allocation4], 4294967280 }
   0xc   :  { %1668 = dma.done.wait [#allocation6], 272  }
   0xd   :  { %1669 = vsyncadd [#allocation6], 4294967024  ;;  %v1473_v0 = vld [vmem:[%s2016_s1 + $0x8] sm:$0xff]  ;;  %v1472_v2 = vld [vmem:[%s2016_s1] sm:$0xff]  ;;  %vm124_vm0 = vcmask 261120   ;;  %v1675_v5 = vmov 0  }
   0xe   :  { %v1744_v1 = vld [vmem:[%s2017_s2 + $0x8] sm:$0xff]  ;;  %143 = vmatpush.bf16.msra.mxu0 %v1473_v0  ;;  %v1753_v3 = vld [vmem:[%s2017_s2] sm:$0xff]  ;;  %s1676_s1 = smov 32  }
   0xf   :  { %212 = vmatpush.bf16.msra.mxu1 %v1744_v1  ;;  %v1468_v4 = vld [vmem:[%s2015_s0] sm:$0xff]  ;;  %v1778_v33 = vld [vmem:[%s2020_s5 + $0x8] sm:$0xff] }
  0x10   :  { %v1766_v6 = vld [vmem:[#allocation3] ss:$0 sm:$0xff]  ;;  %v1783_v34 = vld [vmem:[%s2019_s4 + $0x8] sm:$0xff]  ;;  %309 = vmatpush.bf16.msra.mxu3 %v1778_v33 }
  0x11   :  { %v1789_v35 = vld [vmem:[%s2020_s5] sm:$0xff]  ;;  %283 = vmatpush.bf16.msra.mxu2 %v1783_v34 }
  0x12   :  { %144 = vmatpush.bf16.msra.mxu0 %v1472_v2  ;;  %v1795_v36 = vld [vmem:[%s2019_s4] sm:$0xff] }
  0x13   :  { %213 = vmatpush.bf16.msra.mxu1 %v1753_v3  ;;  %v1818_v48 = vld [vmem:[%s2021_s6] ss:$0 sm:$0xff] }
  0x14   :  { %310 = vmatpush.bf16.msra.mxu3 %v1789_v35 }
  0x15   :  { %1376 = vmatmul.msk.bf16.vlgmr.msra.gmra.mxu0 %vm124_vm0, %v1468_v4  ;;  %284 = vmatpush.bf16.msra.mxu2 %v1795_v36 }
  0x16   :  { %761 = vmatpush.bf16.msrb.mxu0 %v1744_v1  ;;  %214 = vmatmul.bf16.vlgmr.msra.gmra.mxu1 %v1675_v5 }
  0x17   :  { %362 = vmatpush.bf16.msrb.mxu1 %v1744_v1  ;;  %311 = vmatmul.bf16.vlgmr.msra.gmra.mxu3 %v1675_v5 }
  0x18   :  { %442 = vmatpush.bf16.msrb.mxu3 %v1778_v33 }
  0x19   :  { %421 = vmatpush.bf16.msrb.mxu2 %v1783_v34 }
  0x1a   :  { %762 = vmatpush.bf16.msrb.mxu0 %v1753_v3 }
  0x1b   :  { %363 = vmatpush.bf16.msrb.mxu1 %v1753_v3 }
  0x1c   :  { %443 = vmatpush.bf16.msrb.mxu3 %v1789_v35 }
  0x1d   :  { %422 = vmatpush.bf16.msrb.mxu2 %v1795_v36 }
  0x1e   :  { %953 = vmatpush.bf16.msra.mxu0 %v1783_v34 }
  0x1f   :  { %495 = vmatpush.bf16.msra.mxu1 %v1744_v1 }
  0x20   :  { %575 = vmatpush.bf16.msra.mxu3 %v1778_v33 }
  0x22   :  { %954 = vmatpush.bf16.msra.mxu0 %v1795_v36 }
  0x23   :  { %496 = vmatpush.bf16.msra.mxu1 %v1753_v3 }
  0x24   :  { %576 = vmatpush.bf16.msra.mxu3 %v1789_v35 }
  0x92   :  { %v146_v7 = vpop.f32.mrf.mxu0 }
  0x93   :  { %v215_v8 = vpop.f32.mrf.mxu1  ;;  %v147_v9 = vadd.f32 %v1766_v6, %v146_v7 }
  0x95   :  { %v219_v10 = vadd.f32 %v215_v8, %v147_v9 }
  0x97   :  { %v1388_v11 = vmul.f32 -1.442695, %v219_v10 }
  0x99   :  { %1492 = vpow2.f32 %v1388_v11 }
  0x9a   :  { %v312_v40 = vpop.f32.mrf.mxu3  ;;  %v148_v43 = vpop.f32.mrf.mxu0 }
  0x9b   :  { %v217_v12 = vpop.f32.mrf.mxu1  ;;  %v149_v44 = vadd.f32 %v1766_v6, %v148_v43 }
  0x9f   :  { %v1493_v13 = vpop.eup %1492 }
  0xa0   :  { %v223_v14 = vadd.f32 1.0, %v1493_v13 }
  0xa2   :  { %1494 = vrcp.f32 %v223_v14  ;;  %v235_v18 = vand.u32 2147483648, %v223_v14  ;;  %v233_v20 = vand.u32 2147483647, %v223_v14  ;;  %vm229_vm2 = vweird.f32 %v223_v14  ;;  %v314_v42 = vpop.f32.mrf.mxu3 }
  0xa4   :  { %v236_v22 = vor.u32 1.1754944e-38, %v235_v18  ;;  %vm234_vm4 = vcmp.eq.f32.partialorder %v233_v20, 8.507059e+37 }
  0xa8   :  { %v1495_v15 = vpop.eup %1494 }
  0xa9   :  { %v225_v16 = vmul.f32 %v1495_v15, %v223_v14  ;;  %vm230_vm1 = vweird.f32 %v1495_v15 }
  0xaa   :  { %vm231_vm3 = vmor %vm229_vm2, %vm230_vm1 }
  0xab   :  { %v226_v17 = vsub.f32 1.0, %v225_v16 }
  0xad   :  { %v227_v19 = vmul.f32 %v1495_v15, %v226_v17 }
  0xaf   :  { %v228_v21 = vadd.f32 %v1495_v15, %v227_v19 }
  0xb1   :  { %v232_v23 = vsel %vm231_vm3, %v1495_v15, %v228_v21 }
  0xb2   :  { %v237_v24 = vsel %vm234_vm4, %v236_v22, %v232_v23 }
  0xb3   :  { %v239_v25 = vmul.f32 2.0, %v237_v24  ;;  %v241_v29 = vmul.f32 0.0, %v237_v24 }
  0xb5   :  { %v1389_v26 = vadd.f32 -1.0, %v239_v25 }
  0xb7   :  { %243 = vrot.lane.b32.xlu0 %v1389_v26, %s1671_s17 }
 0x129   :  { %v244_v27 = vpop.permute.xlu0 %243 }
 0x12a   :  { %v246_v28 = vmul.f32 %v244_v27, %v237_v24 }
 0x12c   :  { %248 = vrot.lane.b32.xlu0 %v246_v28, %s1676_s1 }
 0x19e   :  { %v249_v30 = vpop.permute.xlu0 %248 }
 0x19f   :  { %v1771_v31 = vadd.f32 %v249_v30, %v241_v29 }
 0x1a1   :  { %1496 = vtanh.f32 %v1771_v31 }
 0x1a7   :  { %v1497_v32 = vpop.eup %1496 }
 0x1a8   :  { %254 = vrot.lane.b32.xlu1 %v1497_v32, %s1671_s17 }
 0x21a   :  { %v255_v37 = vpop.permute.xlu1 %254 }
 0x21b   :  { %v257_v38 = vmul.f32 %v255_v37, %v237_v24 }
 0x21d   :  { %v258_v39 = vpack.c.bf16 %v257_v38, %v257_v38 }
 0x21f   :  { %260 = vrot.lane.b32.xlu1 %v258_v39, %s1676_s1 }
 0x291   :  { %v261_v41 = vpop.permute.xlu1 %260 }
 0x292   :  { %1398 = vmatmul.msk.bf16.vlgmr.msra.gmra.mxu2 %vm124_vm0, %v261_v41  ;;  %1409 = vmatmul.msk.bf16.vlgmr.msrb.gmra.mxu1 %vm124_vm0, %v261_v41  ;;  %v1469_v41 = vld [vmem:[%s2015_s0 + $0x8] sm:$0xff] }
 0x293   :  { %554 = vmatpush.bf16.msra.mxu2 %v1783_v34  ;;  %628 = vmatpush.bf16.msrb.mxu1 %v1744_v1 }
 0x294   :  { %1377 = vmatmul.msk.bf16.gmra.mxu0 %vm124_vm0, %v1469_v41 }
 0x297   :  { %555 = vmatpush.bf16.msra.mxu2 %v1795_v36  ;;  %629 = vmatpush.bf16.msrb.mxu1 %v1753_v3 }
 0x30f   :  { %v365_v45 = vpop.f32.mrf.mxu1 }
 0x310   :  { %v369_v46 = vadd.f32 %v365_v45, %v149_v44 }
 0x312   :  { %v1410_v47 = vmul.f32 -1.442695, %v369_v46 }
 0x314   :  { %1498 = vpow2.f32 %v1410_v47  ;;  %v151_v47 = vpop.f32.mrf.mxu0 }
 0x315   :  { %v286_v49 = vpop.f32.mrf.mxu2 }
 0x316   :  { %v290_v50 = vadd.f32 %v1818_v48, %v286_v49  ;;  %v152_v49 = vadd.f32 %v1766_v6, %v151_v47 }
 0x317   :  { %v367_v51 = vpop.f32.mrf.mxu1 }
 0x318   :  { %v316_v52 = vadd.f32 %v312_v40, %v290_v50 }
 0x31a   :  { %v1499_v53 = vpop.eup %1498  ;;  %v1407_v54 = vmul.f32 -1.442695, %v316_v52 }
 0x31b   :  { %v373_v55 = vadd.f32 1.0, %v1499_v53 }
 0x31c   :  { %1500 = vpow2.f32 %v1407_v54 }
 0x31d   :  { %1502 = vrcp.f32 %v373_v55  ;;  %v288_v56 = vpop.f32.mrf.mxu2  ;;  %v385_v62 = vand.u32 2147483648, %v373_v55  ;;  %v383_v0 = vand.u32 2147483647, %v373_v55  ;;  %vm379_vm6 = vweird.f32 %v373_v55 }
 0x31f   :  { %v386_v5 = vor.u32 1.1754944e-38, %v385_v62  ;;  %vm384_vm8 = vcmp.eq.f32.partialorder %v383_v0, 8.507059e+37 }
 0x322   :  { %v1501_v57 = vpop.eup %1500 }
 0x323   :  { %v1503_v58 = vpop.eup %1502  ;;  %v320_v59 = vadd.f32 1.0, %v1501_v57 }
 0x324   :  { %v375_v60 = vmul.f32 %v1503_v58, %v373_v55  ;;  %vm380_vm5 = vweird.f32 %v1503_v58 }
 0x325   :  { %1504 = vrcp.f32 %v320_v59  ;;  %vm381_vm7 = vmor %vm379_vm6, %vm380_vm5  ;;  %v332_v12 = vand.u32 2147483648, %v320_v59  ;;  %v330_v15 = vand.u32 2147483647, %v320_v59  ;;  %vm326_vm10 = vweird.f32 %v320_v59 }
 0x326   :  { %v376_v61 = vsub.f32 1.0, %v375_v60 }
 0x327   :  { %v333_v17 = vor.u32 1.1754944e-38, %v332_v12  ;;  %vm331_vm12 = vcmp.eq.f32.partialorder %v330_v15, 8.507059e+37 }
 0x328   :  { %v377_v63 = vmul.f32 %v1503_v58, %v376_v61 }
 0x32a   :  { %v378_v2 = vadd.f32 %v1503_v58, %v377_v63 }
 0x32b   :  { %v1505_v4 = vpop.eup %1504 }
 0x32c   :  { %v382_v7 = vsel %vm381_vm7, %v1503_v58, %v378_v2  ;;  %v322_v8 = vmul.f32 %v1505_v4, %v320_v59  ;;  %vm327_vm9 = vweird.f32 %v1505_v4 }
 0x32d   :  { %v387_v9 = vsel %vm384_vm8, %v386_v5, %v382_v7  ;;  %vm328_vm11 = vmor %vm326_vm10, %vm327_vm9 }
 0x32e   :  { %v389_v10 = vmul.f32 2.0, %v387_v9  ;;  %v323_v11 = vsub.f32 1.0, %v322_v8  ;;  %v391_v26 = vmul.f32 %v387_v9, %v1771_v31 }
 0x330   :  { %v1411_v13 = vadd.f32 -1.0, %v389_v10  ;;  %v324_v14 = vmul.f32 %v1505_v4, %v323_v11 }
 0x332   :  { %393 = vrot.lane.b32.xlu2 %v1411_v13, %s1671_s17  ;;  %v325_v16 = vadd.f32 %v1505_v4, %v324_v14 }
 0x334   :  { %v329_v18 = vsel %vm328_vm11, %v1505_v4, %v325_v16 }
 0x335   :  { %v334_v19 = vsel %vm331_vm12, %v333_v17, %v329_v18 }
 0x336   :  { %v336_v20 = vmul.f32 2.0, %v334_v19  ;;  %v338_v29 = vmul.f32 0.0, %v334_v19 }
 0x338   :  { %v1408_v21 = vadd.f32 -1.0, %v336_v20 }
 0x33a   :  { %340 = vrot.lane.b32.xlu2 %v1408_v21, %s1671_s17 }
 0x38c   :  { %v394_v22 = vpop.permute.xlu2 %393 }
 0x38d   :  { %v396_v23 = vmul.f32 %v394_v22, %v387_v9 }
 0x38f   :  { %398 = vrot.lane.b32.xlu0 %v396_v23, %s1676_s1 }
 0x394   :  { %v341_v24 = vpop.permute.xlu2 %340 }
 0x395   :  { %v343_v25 = vmul.f32 %v341_v24, %v334_v19 }
 0x397   :  { %345 = vrot.lane.b32.xlu1 %v343_v25, %s1676_s1 }
 0x401   :  { %v399_v27 = vpop.permute.xlu0 %398 }
 0x402   :  { %v1826_v28 = vadd.f32 %v399_v27, %v391_v26 }
 0x404   :  { %1506 = vtanh.f32 %v1826_v28 }
 0x409   :  { %v346_v30 = vpop.permute.xlu1 %345 }
 0x40a   :  { %v1507_v32 = vpop.eup %1506  ;;  %v1829_v37 = vadd.f32 %v346_v30, %v338_v29 }
 0x40b   :  { %404 = vrot.lane.b32.xlu2 %v1507_v32, %s1671_s17 }
 0x40c   :  { %1508 = vtanh.f32 %v1829_v37 }
 0x412   :  { %v1509_v38 = vpop.eup %1508 }
 0x413   :  { %351 = vrot.lane.b32.xlu0 %v1509_v38, %s1671_s17 }
 0x465   :  { %v405_v39 = vpop.permute.xlu2 %404 }
 0x466   :  { %v407_v40 = vmul.f32 %v405_v39, %v387_v9 }
 0x468   :  { %v408_v31 = vpack.c.bf16 %v407_v40, %v407_v40 }
 0x46a   :  { %410 = vrot.lane.b32.xlu1 %v408_v31, %s1676_s1 }
 0x485   :  { %v352_v42 = vpop.permute.xlu0 %351 }
 0x486   :  { %v354_v43 = vmul.f32 %v352_v42, %v334_v19 }
 0x488   :  { %v429_v44 = vpack.c.bf16 %v354_v43, %v354_v43 }
 0x48a   :  { %431 = vrot.lane.b32.xlu2 %v429_v44, %s1676_s1 }
 0x4dc   :  { %v411_v45 = vpop.permute.xlu1 %410 }
 0x4dd   :  { %1412 = vmatmul.msk.bf16.vlgmr.msrb.gmra.mxu2 %vm124_vm0, %v411_v45  ;;  %1416 = vmatmul.msk.bf16.vlgmr.msra.gmra.mxu1 %vm124_vm0, %v411_v45 }
 0x4de   :  { %687 = vmatpush.bf16.msrb.mxu2 %v1783_v34  ;;  %820 = vmatpush.bf16.msra.mxu1 %v1783_v34 }
 0x4e2   :  { %688 = vmatpush.bf16.msrb.mxu2 %v1795_v36  ;;  %821 = vmatpush.bf16.msra.mxu1 %v1795_v36 }
 0x4e4   :  { %v432_v46 = vpop.permute.xlu2 %431 }
 0x4e5   :  { %1413 = vmatmul.msk.bf16.vlgmr.msrb.gmra.mxu3 %vm124_vm0, %v432_v46 }
 0x4e6   :  { %708 = vmatpush.bf16.msrb.mxu3 %v1778_v33 }
 0x4ea   :  { %709 = vmatpush.bf16.msrb.mxu3 %v1789_v35 }
 0x55a   :  { %v498_v50 = vpop.f32.mrf.mxu1 }
 0x55b   :  { %v502_v51 = vadd.f32 %v498_v50, %v152_v49 }
 0x55d   :  { %v1417_v52 = vmul.f32 -1.442695, %v502_v51 }
 0x55f   :  { %1510 = vpow2.f32 %v1417_v52 }
 0x560   :  { %v424_v53 = vpop.f32.mrf.mxu2 }
 0x561   :  { %v428_v57 = vadd.f32 %v1818_v48, %v424_v53  ;;  %v153_v53 = vpop.f32.mrf.mxu0 }
 0x562   :  { %v500_v54 = vpop.f32.mrf.mxu1 }
 0x563   :  { %v154_v54 = vadd.f32 %v1766_v6, %v153_v53 }
 0x565   :  { %v1511_v55 = vpop.eup %1510 }
 0x566   :  { %v506_v56 = vadd.f32 1.0, %v1511_v55 }
 0x568   :  { %1512 = vrcp.f32 %v506_v56  ;;  %v426_v58 = vpop.f32.mrf.mxu2  ;;  %v445_v59 = vpop.f32.mrf.mxu3  ;;  %v518_v4 = vand.u32 2147483648, %v506_v56  ;;  %v516_v8 = vand.u32 2147483647, %v506_v56  ;;  %vm512_vm14 = vweird.f32 %v506_v56 }
 0x569   :  { %v449_v60 = vadd.f32 %v445_v59, %v428_v57 }
 0x56a   :  { %v519_v11 = vor.u32 1.1754944e-38, %v518_v4  ;;  %vm517_vm1 = vcmp.eq.f32.partialorder %v516_v8, 8.507059e+37 }
 0x56b   :  { %v1414_v61 = vmul.f32 -1.442695, %v449_v60 }
 0x56d   :  { %1514 = vpow2.f32 %v1414_v61 }
 0x56e   :  { %v1513_v62 = vpop.eup %1512 }
 0x56f   :  { %v508_v63 = vmul.f32 %v1513_v62, %v506_v56  ;;  %vm513_vm13 = vweird.f32 %v1513_v62 }
 0x570   :  { %v447_v0 = vpop.f32.mrf.mxu3  ;;  %vm514_vm15 = vmor %vm512_vm14, %vm513_vm13 }
 0x571   :  { %v509_v2 = vsub.f32 1.0, %v508_v63 }
 0x573   :  { %v1515_v5 = vpop.eup %1514  ;;  %v510_v7 = vmul.f32 %v1513_v62, %v509_v2 }
 0x574   :  { %v453_v9 = vadd.f32 1.0, %v1515_v5 }
 0x575   :  { %v511_v10 = vadd.f32 %v1513_v62, %v510_v7 }
 0x576   :  { %1516 = vrcp.f32 %v453_v9  ;;  %v465_v19 = vand.u32 2147483648, %v453_v9  ;;  %v463_v21 = vand.u32 2147483647, %v453_v9  ;;  %vm459_vm3 = vweird.f32 %v453_v9 }
 0x577   :  { %v515_v12 = vsel %vm514_vm15, %v1513_v62, %v511_v10 }
 0x578   :  { %v520_v13 = vsel %vm517_vm1, %v519_v11, %v515_v12  ;;  %v466_v23 = vor.u32 1.1754944e-38, %v465_v19  ;;  %vm464_vm5 = vcmp.eq.f32.partialorder %v463_v21, 8.507059e+37 }
 0x579   :  { %v522_v14 = vmul.f32 2.0, %v520_v13  ;;  %v524_v39 = vmul.f32 %v520_v13, %v1826_v28 }
 0x57b   :  { %v1418_v15 = vadd.f32 -1.0, %v522_v14 }
 0x57c   :  { %v1517_v16 = vpop.eup %1516 }
 0x57d   :  { %v455_v17 = vmul.f32 %v1517_v16, %v453_v9  ;;  %526 = vrot.lane.b32.xlu0 %v1418_v15, %s1671_s17  ;;  %vm460_vm2 = vweird.f32 %v1517_v16 }
 0x57e   :  { %vm461_vm4 = vmor %vm459_vm3, %vm460_vm2 }
 0x57f   :  { %v456_v18 = vsub.f32 1.0, %v455_v17 }
 0x581   :  { %v457_v20 = vmul.f32 %v1517_v16, %v456_v18 }
 0x583   :  { %v458_v22 = vadd.f32 %v1517_v16, %v457_v20 }
 0x585   :  { %v462_v24 = vsel %vm461_vm4, %v1517_v16, %v458_v22 }
 0x586   :  { %v467_v25 = vsel %vm464_vm5, %v466_v23, %v462_v24 }
 0x587   :  { %v469_v26 = vmul.f32 2.0, %v467_v25  ;;  %v471_v42 = vmul.f32 %v467_v25, %v1829_v37 }
 0x589   :  { %v1415_v27 = vadd.f32 -1.0, %v469_v26 }
 0x58b   :  { %473 = vrot.lane.b32.xlu1 %v1415_v27, %s1671_s17 }
 0x5ef   :  { %v527_v29 = vpop.permute.xlu0 %526 }
 0x5f0   :  { %v529_v30 = vmul.f32 %v527_v29, %v520_v13 }
 0x5f2   :  { %531 = vrot.lane.b32.xlu2 %v529_v30, %s1676_s1 }
 0x5fd   :  { %v474_v32 = vpop.permute.xlu1 %473 }
 0x5fe   :  { %v476_v38 = vmul.f32 %v474_v32, %v467_v25 }
 0x600   :  { %478 = vrot.lane.b32.xlu0 %v476_v38, %s1676_s1 }
 0x64c   :  { %v532_v40 = vpop.permute.xlu2 %531 }
 0x64d   :  { %v1856_v31 = vadd.f32 %v532_v40, %v524_v39 }
 0x64f   :  { %1518 = vtanh.f32 %v1856_v31 }
 0x655   :  { %v1519_v41 = vpop.eup %1518 }
 0x656   :  { %537 = vrot.lane.b32.xlu1 %v1519_v41, %s1671_s17 }
 0x672   :  { %v479_v43 = vpop.permute.xlu0 %478 }
 0x673   :  { %v1861_v44 = vadd.f32 %v479_v43, %v471_v42 }
 0x675   :  { %1520 = vtanh.f32 %v1861_v44 }
 0x67b   :  { %v1521_v45 = vpop.eup %1520 }
 0x67c   :  { %484 = vrot.lane.b32.xlu2 %v1521_v45, %s1671_s17 }
 0x6c8   :  { %v538_v46 = vpop.permute.xlu1 %537 }
 0x6c9   :  { %v540_v28 = vmul.f32 %v538_v46, %v520_v13 }
 0x6cb   :  { %v541_v47 = vpack.c.bf16 %v540_v28, %v540_v28 }
 0x6cd   :  { %543 = vrot.lane.b32.xlu0 %v541_v47, %s1676_s1 }
 0x6d6   :  { %v485_v49 = vpop.permute.xlu2 %484 }
 0x6d7   :  { %v487_v50 = vmul.f32 %v485_v49, %v467_v25 }
 0x6d9   :  { %v562_v51 = vpack.c.bf16 %v487_v50, %v487_v50 }
 0x6db   :  { %564 = vrot.lane.b32.xlu1 %v562_v51, %s1676_s1 }
 0x73f   :  { %v544_v52 = vpop.permute.xlu0 %543 }
 0x740   :  { %1419 = vmatmul.msk.bf16.vlgmr.msra.gmra.mxu2 %vm124_vm0, %v544_v52  ;;  %1423 = vmatmul.msk.bf16.vlgmr.msrb.gmra.mxu1 %vm124_vm0, %v544_v52 }
 0x741   :  { %841 = vmatpush.bf16.msra.mxu2 %v1778_v33  ;;  %974 = vmatpush.bf16.msrb.mxu1 %v1778_v33 }
 0x745   :  { %842 = vmatpush.bf16.msra.mxu2 %v1789_v35  ;;  %975 = vmatpush.bf16.msrb.mxu1 %v1789_v35 }
 0x74d   :  { %v565_v37 = vpop.permute.xlu1 %564 }
 0x74e   :  { %1420 = vmatmul.msk.bf16.vlgmr.msra.gmra.mxu3 %vm124_vm0, %v565_v37 }
 0x74f   :  { %894 = vmatpush.bf16.msra.mxu3 %v1744_v1 }
 0x753   :  { %895 = vmatpush.bf16.msra.mxu3 %v1753_v3 }
 0x7bd   :  { %v631_v55 = vpop.f32.mrf.mxu1 }
 0x7be   :  { %v635_v56 = vadd.f32 %v631_v55, %v154_v54 }
 0x7c0   :  { %v1424_v57 = vmul.f32 -1.442695, %v635_v56 }
 0x7c2   :  { %1522 = vpow2.f32 %v1424_v57 }
 0x7c3   :  { %v557_v58 = vpop.f32.mrf.mxu2 }
 0x7c4   :  { %v561_v63 = vadd.f32 %v1818_v48, %v557_v58 }
 0x7c5   :  { %v633_v59 = vpop.f32.mrf.mxu1 }
 0x7c8   :  { %v1523_v60 = vpop.eup %1522 }
 0x7c9   :  { %v639_v61 = vadd.f32 1.0, %v1523_v60 }
 0x7cb   :  { %1524 = vrcp.f32 %v639_v61  ;;  %v559_v62 = vpop.f32.mrf.mxu2  ;;  %v651_v9 = vand.u32 2147483648, %v639_v61  ;;  %v649_v11 = vand.u32 2147483647, %v639_v61  ;;  %vm645_vm7 = vweird.f32 %v639_v61 }
 0x7cd   :  { %v652_v14 = vor.u32 1.1754944e-38, %v651_v9  ;;  %vm650_vm9 = vcmp.eq.f32.partialorder %v649_v11, 8.507059e+37 }
 0x7d1   :  { %v1525_v0 = vpop.eup %1524  ;;  %v578_v2 = vpop.f32.mrf.mxu3 }
 0x7d2   :  { %v641_v4 = vmul.f32 %v1525_v0, %v639_v61  ;;  %v582_v5 = vadd.f32 %v578_v2, %v561_v63  ;;  %vm646_vm6 = vweird.f32 %v1525_v0 }
 0x7d3   :  { %vm647_vm8 = vmor %vm645_vm7, %vm646_vm6 }
 0x7d4   :  { %v642_v7 = vsub.f32 1.0, %v641_v4  ;;  %v1421_v8 = vmul.f32 -1.442695, %v582_v5 }
 0x7d6   :  { %1526 = vpow2.f32 %v1421_v8  ;;  %v643_v10 = vmul.f32 %v1525_v0, %v642_v7 }
 0x7d8   :  { %v644_v12 = vadd.f32 %v1525_v0, %v643_v10 }
 0x7d9   :  { %v580_v13 = vpop.f32.mrf.mxu3 }
 0x7da   :  { %v648_v15 = vsel %vm647_vm8, %v1525_v0, %v644_v12 }
 0x7db   :  { %v653_v16 = vsel %vm650_vm9, %v652_v14, %v648_v15 }
 0x7dc   :  { %v1527_v17 = vpop.eup %1526  ;;  %v655_v18 = vmul.f32 2.0, %v653_v16  ;;  %v657_v45 = vmul.f32 %v653_v16, %v1856_v31  ;;  %v1470_v31 = vld [vmem:[%s2015_s0 + $0x10] sm:$0xff] }
 0x7dd   :  { %v586_v19 = vadd.f32 1.0, %v1527_v17  ;;  %1378 = vmatmul.msk.bf16.gmra.mxu0 %vm124_vm0, %v1470_v31 }
 0x7de   :  { %v1425_v20 = vadd.f32 -1.0, %v655_v18 }
 0x7df   :  { %1528 = vrcp.f32 %v586_v19  ;;  %v598_v24 = vand.u32 2147483648, %v586_v19  ;;  %v596_v26 = vand.u32 2147483647, %v586_v19  ;;  %vm592_vm11 = vweird.f32 %v586_v19 }
 0x7e0   :  { %659 = vrot.lane.b32.xlu2 %v1425_v20, %s1671_s17 }
 0x7e1   :  { %v599_v29 = vor.u32 1.1754944e-38, %v598_v24  ;;  %vm597_vm13 = vcmp.eq.f32.partialorder %v596_v26, 8.507059e+37 }
 0x7e5   :  { %v1529_v21 = vpop.eup %1528 }
 0x7e6   :  { %v588_v22 = vmul.f32 %v1529_v21, %v586_v19  ;;  %vm593_vm10 = vweird.f32 %v1529_v21 }
 0x7e7   :  { %vm594_vm12 = vmor %vm592_vm11, %vm593_vm10 }
 0x7e8   :  { %v589_v23 = vsub.f32 1.0, %v588_v22 }
 0x7ea   :  { %v590_v25 = vmul.f32 %v1529_v21, %v589_v23 }
 0x7ec   :  { %v591_v27 = vadd.f32 %v1529_v21, %v590_v25 }
 0x7ee   :  { %v595_v30 = vsel %vm594_vm12, %v1529_v21, %v591_v27 }
 0x7ef   :  { %v600_v32 = vsel %vm597_vm13, %v599_v29, %v595_v30 }
 0x7f0   :  { %v602_v38 = vmul.f32 2.0, %v600_v32  ;;  %v604_v49 = vmul.f32 %v600_v32, %v1861_v44  ;;  %v1471_v44 = vld [vmem:[%s2015_s0 + $0x18] sm:$0xff] }
 0x7f1   :  { %1379 = vmatmul.msk.bf16.gmra.mxu0 %vm124_vm0, %v1471_v44 }
 0x7f2   :  { %v1422_v39 = vadd.f32 -1.0, %v602_v38 }
 0x7f4   :  { %606 = vrot.lane.b32.xlu0 %v1422_v39, %s1671_s17 }
 0x83a   :  { %v660_v40 = vpop.permute.xlu2 %659 }
 0x83b   :  { %v662_v41 = vmul.f32 %v660_v40, %v653_v16 }
 0x83d   :  { %664 = vrot.lane.b32.xlu1 %v662_v41, %s1676_s1 }
 0x85a   :  { %v156_v60 = vpop.f32.mrf.mxu0 }
 0x85b   :  { %v157_v0 = vadd.f32 %v1766_v6, %v156_v60 }
 0x862   :  { %v1911_v61 = vpop.f32.mrf.mxu0 }
 0x866   :  { %v607_v42 = vpop.permute.xlu0 %606 }
 0x867   :  { %v609_v43 = vmul.f32 %v607_v42, %v600_v32 }
 0x869   :  { %611 = vrot.lane.b32.xlu2 %v609_v43, %s1676_s1 }
 0x86e   :  { %v1913_v62 = vpop.f32.mrf.mxu0 }
 0x876   :  { %v1915_v63 = vpop.f32.mrf.mxu0 }
 0x8af   :  { %v665_v46 = vpop.permute.xlu1 %664 }
 0x8b0   :  { %v1883_v28 = vadd.f32 %v665_v46, %v657_v45 }
 0x8b2   :  { %1530 = vtanh.f32 %v1883_v28 }
 0x8b8   :  { %v1531_v47 = vpop.eup %1530 }
 0x8b9   :  { %670 = vrot.lane.b32.xlu0 %v1531_v47, %s1671_s17 }
 0x8c3   :  { %v612_v50 = vpop.permute.xlu2 %611 }
 0x8c4   :  { %v1888_v51 = vadd.f32 %v612_v50, %v604_v49 }
 0x8c6   :  { %1532 = vtanh.f32 %v1888_v51 }
 0x8cc   :  { %v1533_v52 = vpop.eup %1532 }
 0x8cd   :  { %617 = vrot.lane.b32.xlu1 %v1533_v52, %s1671_s17 }
 0x92b   :  { %v671_v37 = vpop.permute.xlu0 %670 }
 0x92c   :  { %v673_v53 = vmul.f32 %v671_v37, %v653_v16 }
 0x92e   :  { %v674_v54 = vpack.c.bf16 %v673_v53, %v673_v53 }
 0x930   :  { %676 = vrot.lane.b32.xlu2 %v674_v54, %s1676_s1 }
 0x93f   :  { %v618_v55 = vpop.permute.xlu1 %617 }
 0x940   :  { %v620_v56 = vmul.f32 %v618_v55, %v600_v32 }
 0x942   :  { %v695_v57 = vpack.c.bf16 %v620_v56, %v620_v56 }
 0x944   :  { %697 = vrot.lane.b32.xlu0 %v695_v57, %s1676_s1 }
 0x98a   :  { %v677_v58 = vpop.permute.xlu2 %676 }
 0x98b   :  { %1426 = vmatmul.msk.bf16.vlgmr.msrb.gmra.mxu2 %vm124_vm0, %v677_v58  ;;  %1430 = vmatmul.msk.bf16.vlgmr.msrb.gmra.mxu0 %vm124_vm0, %v677_v58 }
 0x98c   :  { %1027 = vmatpush.bf16.msrb.mxu2 %v1744_v1  ;;  %1107 = vmatpush.bf16.msrb.mxu0 %v1778_v33 }
 0x990   :  { %1028 = vmatpush.bf16.msrb.mxu2 %v1753_v3  ;;  %1108 = vmatpush.bf16.msrb.mxu0 %v1789_v35 }
 0x9b6   :  { %v698_v59 = vpop.permute.xlu0 %697 }
 0x9b7   :  { %1427 = vmatmul.msk.bf16.vlgmr.msrb.gmra.mxu3 %vm124_vm0, %v698_v59 }
 0x9b8   :  { %1086 = vmatpush.bf16.msrb.mxu3 %v1783_v34 }
 0x9bc   :  { %1087 = vmatpush.bf16.msrb.mxu3 %v1795_v36 }
 0xa08   :  { %v764_v2 = vpop.f32.mrf.mxu0 }
 0xa09   :  { %v768_v4 = vadd.f32 %v764_v2, %v157_v0 }
 0xa0b   :  { %v1431_v5 = vmul.f32 -1.442695, %v768_v4 }
 0xa0d   :  { %1534 = vpow2.f32 %v1431_v5 }
 0xa0e   :  { %v690_v7 = vpop.f32.mrf.mxu2 }
 0xa0f   :  { %v694_v24 = vadd.f32 %v1818_v48, %v690_v7 }
 0xa10   :  { %v766_v8 = vpop.f32.mrf.mxu0 }
 0xa13   :  { %v1535_v9 = vpop.eup %1534 }
 0xa14   :  { %v772_v10 = vadd.f32 1.0, %v1535_v9 }
 0xa16   :  { %1536 = vrcp.f32 %v772_v10  ;;  %v692_v11 = vpop.f32.mrf.mxu2  ;;  %v784_v15 = vand.u32 2147483648, %v772_v10  ;;  %v782_v17 = vand.u32 2147483647, %v772_v10  ;;  %vm778_vm15 = vweird.f32 %v772_v10 }
 0xa17   :  { %v159_v11 = vadd.f32 %v1766_v6, %v1911_v61 }
 0xa18   :  { %v785_v19 = vor.u32 1.1754944e-38, %v784_v15  ;;  %vm783_vm2 = vcmp.eq.f32.partialorder %v782_v17, 8.507059e+37 }
 0xa1c   :  { %v1537_v12 = vpop.eup %1536 }
 0xa1d   :  { %v774_v13 = vmul.f32 %v1537_v12, %v772_v10  ;;  %vm779_vm14 = vweird.f32 %v1537_v12 }
 0xa1e   :  { %vm780_vm1 = vmor %vm778_vm15, %vm779_vm14 }
 0xa1f   :  { %v775_v14 = vsub.f32 1.0, %v774_v13 }
 0xa21   :  { %v776_v16 = vmul.f32 %v1537_v12, %v775_v14 }
 0xa23   :  { %v777_v18 = vadd.f32 %v1537_v12, %v776_v16 }
 0xa25   :  { %v781_v20 = vsel %vm780_vm1, %v1537_v12, %v777_v18 }
 0xa26   :  { %v786_v21 = vsel %vm783_vm2, %v785_v19, %v781_v20 }
 0xa27   :  { %v788_v22 = vmul.f32 2.0, %v786_v21  ;;  %v790_v44 = vmul.f32 %v786_v21, %v1883_v28 }
 0xa29   :  { %v1432_v23 = vadd.f32 -1.0, %v788_v22 }
 0xa2b   :  { %792 = vrot.lane.b32.xlu1 %v1432_v23, %s1671_s17 }
 0xa3a   :  { %v711_v25 = vpop.f32.mrf.mxu3 }
 0xa3b   :  { %v715_v26 = vadd.f32 %v711_v25, %v694_v24 }
 0xa3d   :  { %v1428_v27 = vmul.f32 -1.442695, %v715_v26 }
 0xa3f   :  { %1538 = vpow2.f32 %v1428_v27 }
 0xa42   :  { %v713_v29 = vpop.f32.mrf.mxu3 }
 0xa45   :  { %v1539_v30 = vpop.eup %1538 }
 0xa46   :  { %v719_v32 = vadd.f32 1.0, %v1539_v30 }
 0xa48   :  { %1540 = vrcp.f32 %v719_v32  ;;  %v731_v41 = vand.u32 2147483648, %v719_v32  ;;  %v729_v43 = vand.u32 2147483647, %v719_v32  ;;  %vm725_vm4 = vweird.f32 %v719_v32 }
 0xa4a   :  { %v732_v46 = vor.u32 1.1754944e-38, %v731_v41  ;;  %vm730_vm6 = vcmp.eq.f32.partialorder %v729_v43, 8.507059e+37 }
 0xa4e   :  { %v1541_v38 = vpop.eup %1540 }
 0xa4f   :  { %v721_v39 = vmul.f32 %v1541_v38, %v719_v32  ;;  %vm726_vm3 = vweird.f32 %v1541_v38 }
 0xa50   :  { %vm727_vm5 = vmor %vm725_vm4, %vm726_vm3 }
 0xa51   :  { %v722_v40 = vsub.f32 1.0, %v721_v39 }
 0xa53   :  { %v723_v42 = vmul.f32 %v1541_v38, %v722_v40 }
 0xa55   :  { %v724_v45 = vadd.f32 %v1541_v38, %v723_v42 }
 0xa57   :  { %v728_v47 = vsel %vm727_vm5, %v1541_v38, %v724_v45 }
 0xa58   :  { %v733_v49 = vsel %vm730_vm6, %v732_v46, %v728_v47 }
 0xa59   :  { %v735_v50 = vmul.f32 2.0, %v733_v49  ;;  %v737_v58 = vmul.f32 %v733_v49, %v1888_v51 }
 0xa5b   :  { %v1429_v52 = vadd.f32 -1.0, %v735_v50 }
 0xa5d   :  { %739 = vrot.lane.b32.xlu2 %v1429_v52, %s1671_s17 }
 0xa9d   :  { %v793_v31 = vpop.permute.xlu1 %792 }
 0xa9e   :  { %v795_v37 = vmul.f32 %v793_v31, %v786_v21 }
 0xaa0   :  { %797 = vrot.lane.b32.xlu0 %v795_v37, %s1676_s1 }
 0xab7   :  { %v740_v53 = vpop.permute.xlu2 %739 }
 0xab8   :  { %v742_v54 = vmul.f32 %v740_v53, %v733_v49 }
 0xaba   :  { %744 = vrot.lane.b32.xlu1 %v742_v54, %s1676_s1 }
 0xb12   :  { %v798_v55 = vpop.permute.xlu0 %797 }
 0xb13   :  { %v1924_v56 = vadd.f32 %v798_v55, %v790_v44 }
 0xb15   :  { %1542 = vtanh.f32 %v1924_v56 }
 0xb1b   :  { %v1543_v57 = vpop.eup %1542 }
 0xb1c   :  { %803 = vrot.lane.b32.xlu2 %v1543_v57, %s1671_s17 }
 0xb2c   :  { %v745_v59 = vpop.permute.xlu1 %744 }
 0xb2d   :  { %v1929_v60 = vadd.f32 %v745_v59, %v737_v58 }
 0xb2f   :  { %1544 = vtanh.f32 %v1929_v60 }
 0xb35   :  { %v1545_v0 = vpop.eup %1544 }
 0xb36   :  { %750 = vrot.lane.b32.xlu0 %v1545_v0, %s1671_s17 }
 0xb76   :  { %v804_v2 = vpop.permute.xlu2 %803 }
 0xb77   :  { %v806_v28 = vmul.f32 %v804_v2, %v786_v21 }
 0xb79   :  { %v807_v4 = vpack.c.bf16 %v806_v28, %v806_v28 }
 0xb7b   :  { %809 = vrot.lane.b32.xlu1 %v807_v4, %s1676_s1 }
 0xba8   :  { %v751_v5 = vpop.permute.xlu0 %750 }
 0xba9   :  { %v753_v7 = vmul.f32 %v751_v5, %v733_v49 }
 0xbab   :  { %v828_v8 = vpack.c.bf16 %v753_v7, %v753_v7 }
 0xbad   :  { %830 = vrot.lane.b32.xlu2 %v828_v8, %s1676_s1 }
 0xbed   :  { %v810_v9 = vpop.permute.xlu1 %809 }
 0xbee   :  { %1433 = vmatmul.msk.bf16.vlgmr.msra.gmra.mxu1 %vm124_vm0, %v810_v9  ;;  %1437 = vmatmul.msk.bf16.vlgmr.msra.gmra.mxu3 %vm124_vm0, %v810_v9 }
 0xbef   :  { %1160 = vmatpush.bf16.msra.mxu1 %v1744_v1  ;;  %1240 = vmatpush.bf16.msra.mxu3 %v1778_v33 }
 0xbf3   :  { %1161 = vmatpush.bf16.msra.mxu1 %v1753_v3  ;;  %1241 = vmatpush.bf16.msra.mxu3 %v1789_v35 }
 0xc07   :  { %v831_v51 = vpop.permute.xlu2 %830 }
 0xc08   :  { %1434 = vmatmul.msk.bf16.vlgmr.msra.gmra.mxu2 %vm124_vm0, %v831_v51 }
 0xc09   :  { %1219 = vmatpush.bf16.msra.mxu2 %v1783_v34 }
 0xc0d   :  { %1220 = vmatpush.bf16.msra.mxu2 %v1795_v36 }
 0xc6b   :  { %v823_v10 = vpop.f32.mrf.mxu1 }
 0xc6c   :  { %v827_v34 = vadd.f32 %v1818_v48, %v823_v10  ;;  %v1966_v10 = vld [vmem:[#allocation3] ss:$0 sm:$0xff] }
 0xc71   :  { %v897_v12 = vpop.f32.mrf.mxu3 }
 0xc72   :  { %v901_v13 = vadd.f32 %v897_v12, %v159_v11  ;;  %v162_v11 = vadd.f32 %v1966_v10, %v1913_v62 }
 0xc73   :  { %v825_v1 = vpop.f32.mrf.mxu1 }
 0xc74   :  { %v1438_v14 = vmul.f32 -1.442695, %v901_v13 }
 0xc76   :  { %1546 = vpow2.f32 %v1438_v14 }
 0xc79   :  { %v899_v33 = vpop.f32.mrf.mxu3 }
 0xc7c   :  { %v1547_v3 = vpop.eup %1546 }
 0xc7d   :  { %v905_v15 = vadd.f32 1.0, %v1547_v3 }
 0xc7f   :  { %1548 = vrcp.f32 %v905_v15  ;;  %v917_v18 = vand.u32 2147483648, %v905_v15  ;;  %v915_v19 = vand.u32 2147483647, %v905_v15  ;;  %vm911_vm8 = vweird.f32 %v905_v15 }
 0xc81   :  { %v918_v21 = vor.u32 1.1754944e-38, %v917_v18  ;;  %vm916_vm10 = vcmp.eq.f32.partialorder %v915_v19, 8.507059e+37 }
 0xc85   :  { %v1549_v35 = vpop.eup %1548 }
 0xc86   :  { %v907_v16 = vmul.f32 %v1549_v35, %v905_v15  ;;  %vm912_vm7 = vweird.f32 %v1549_v35 }
 0xc87   :  { %vm913_vm9 = vmor %vm911_vm8, %vm912_vm7 }
 0xc88   :  { %v908_v17 = vsub.f32 1.0, %v907_v16 }
 0xc8a   :  { %v909_v36 = vmul.f32 %v1549_v35, %v908_v17 }
 0xc8b   :  { %v844_v20 = vpop.f32.mrf.mxu2 }
 0xc8c   :  { %v848_v6 = vadd.f32 %v844_v20, %v827_v34  ;;  %v910_v61 = vadd.f32 %v1549_v35, %v909_v36 }
 0xc8e   :  { %v1435_v22 = vmul.f32 -1.442695, %v848_v6  ;;  %v914_v23 = vsel %vm913_vm9, %v1549_v35, %v910_v61 }
 0xc8f   :  { %v919_v24 = vsel %vm916_vm10, %v918_v21, %v914_v23 }
 0xc90   :  { %1550 = vpow2.f32 %v1435_v22  ;;  %v921_v25 = vmul.f32 2.0, %v919_v24  ;;  %v923_v54 = vmul.f32 %v919_v24, %v1924_v56 }
 0xc92   :  { %v1439_v26 = vadd.f32 -1.0, %v921_v25 }
 0xc93   :  { %v846_v27 = vpop.f32.mrf.mxu2 }
 0xc94   :  { %925 = vrot.lane.b32.xlu0 %v1439_v26, %s1671_s17 }
 0xc96   :  { %v1551_v29 = vpop.eup %1550 }
 0xc97   :  { %v852_v30 = vadd.f32 1.0, %v1551_v29 }
 0xc99   :  { %1552 = vrcp.f32 %v852_v30  ;;  %v864_v40 = vand.u32 2147483648, %v852_v30  ;;  %v862_v42 = vand.u32 2147483647, %v852_v30  ;;  %vm858_vm12 = vweird.f32 %v852_v30 }
 0xc9b   :  { %v865_v45 = vor.u32 1.1754944e-38, %v864_v40  ;;  %vm863_vm14 = vcmp.eq.f32.partialorder %v862_v42, 8.507059e+37 }
 0xc9f   :  { %v1553_v32 = vpop.eup %1552 }
 0xca0   :  { %v854_v38 = vmul.f32 %v1553_v32, %v852_v30  ;;  %vm859_vm11 = vweird.f32 %v1553_v32 }
 0xca1   :  { %vm860_vm13 = vmor %vm858_vm12, %vm859_vm11 }
 0xca2   :  { %v855_v39 = vsub.f32 1.0, %v854_v38 }
 0xca4   :  { %v856_v41 = vmul.f32 %v1553_v32, %v855_v39 }
 0xca6   :  { %v857_v43 = vadd.f32 %v1553_v32, %v856_v41 }
 0xca8   :  { %v861_v46 = vsel %vm860_vm13, %v1553_v32, %v857_v43 }
 0xca9   :  { %v866_v47 = vsel %vm863_vm14, %v865_v45, %v861_v46 }
 0xcaa   :  { %v868_v49 = vmul.f32 2.0, %v866_v47  ;;  %v870_v58 = vmul.f32 %v866_v47, %v1929_v60 }
 0xcac   :  { %v1436_v50 = vadd.f32 -1.0, %v868_v49 }
 0xcae   :  { %872 = vrot.lane.b32.xlu1 %v1436_v50, %s1671_s17 }
 0xd06   :  { %v926_v52 = vpop.permute.xlu0 %925 }
 0xd07   :  { %v928_v31 = vmul.f32 %v926_v52, %v919_v24 }
 0xd09   :  { %930 = vrot.lane.b32.xlu2 %v928_v31, %s1676_s1 }
 0xd20   :  { %v873_v37 = vpop.permute.xlu1 %872 }
 0xd21   :  { %v875_v53 = vmul.f32 %v873_v37, %v866_v47 }
 0xd23   :  { %877 = vrot.lane.b32.xlu0 %v875_v53, %s1676_s1 }
 0xd63   :  { %v931_v44 = vpop.permute.xlu2 %930 }
 0xd64   :  { %v1952_v55 = vadd.f32 %v931_v44, %v923_v54 }
 0xd66   :  { %1554 = vtanh.f32 %v1952_v55 }
 0xd6c   :  { %v1555_v57 = vpop.eup %1554 }
 0xd6d   :  { %936 = vrot.lane.b32.xlu1 %v1555_v57, %s1671_s17 }
 0xd95   :  { %v878_v59 = vpop.permute.xlu0 %877 }
 0xd96   :  { %v1957_v0 = vadd.f32 %v878_v59, %v870_v58 }
 0xd98   :  { %1556 = vtanh.f32 %v1957_v0 }
 0xd9e   :  { %v1557_v2 = vpop.eup %1556 }
 0xd9f   :  { %883 = vrot.lane.b32.xlu2 %v1557_v2, %s1671_s17 }
 0xddf   :  { %v937_v28 = vpop.permute.xlu1 %936 }
 0xde0   :  { %v939_v56 = vmul.f32 %v937_v28, %v919_v24 }
 0xde2   :  { %v940_v4 = vpack.c.bf16 %v939_v56, %v939_v56 }
 0xde4   :  { %942 = vrot.lane.b32.xlu0 %v940_v4, %s1676_s1 }
 0xdf9   :  { %v884_v5 = vpop.permute.xlu2 %883 }
 0xdfa   :  { %v886_v7 = vmul.f32 %v884_v5, %v866_v47 }
 0xdfc   :  { %v961_v8 = vpack.c.bf16 %v886_v7, %v886_v7 }
 0xdfe   :  { %963 = vrot.lane.b32.xlu1 %v961_v8, %s1676_s1 }
 0xe56   :  { %v943_v9 = vpop.permute.xlu0 %942 }
 0xe57   :  { %1440 = vmatmul.msk.bf16.vlgmr.msra.gmra.mxu0 %vm124_vm0, %v943_v9  ;;  %1444 = vmatmul.msk.bf16.vlgmr.msrb.gmra.mxu2 %vm124_vm0, %v943_v9  ;;  %v164_v9 = vadd.f32 %v1966_v10, %v1915_v63 }
 0xe70   :  { %v964_v60 = vpop.permute.xlu1 %963 }
 0xe71   :  { %1441 = vmatmul.msk.bf16.vlgmr.msrb.gmra.mxu1 %vm124_vm0, %v964_v60 }
 0xed4   :  { %v956_v51 = vpop.f32.mrf.mxu0 }
 0xed5   :  { %v960_v35 = vadd.f32 %v1818_v48, %v956_v51 }
 0xeda   :  { %v1030_v12 = vpop.f32.mrf.mxu2 }
 0xedb   :  { %v1034_v13 = vadd.f32 %v1030_v12, %v162_v11 }
 0xedc   :  { %v958_v1 = vpop.f32.mrf.mxu0 }
 0xedd   :  { %v1445_v14 = vmul.f32 -1.442695, %v1034_v13 }
 0xedf   :  { %1558 = vpow2.f32 %v1445_v14 }
 0xee2   :  { %v1032_v33 = vpop.f32.mrf.mxu2 }
 0xee5   :  { %v1559_v3 = vpop.eup %1558 }
 0xee6   :  { %v1038_v15 = vadd.f32 1.0, %v1559_v3 }
 0xee8   :  { %1560 = vrcp.f32 %v1038_v15  ;;  %v1050_v20 = vand.u32 2147483648, %v1038_v15  ;;  %v1048_v6 = vand.u32 2147483647, %v1038_v15  ;;  %vm1044_vm1 = vweird.f32 %v1038_v15 }
 0xeea   :  { %v1051_v22 = vor.u32 1.1754944e-38, %v1050_v20  ;;  %vm1049_vm3 = vcmp.eq.f32.partialorder %v1048_v6, 8.507059e+37 }
 0xeee   :  { %v1561_v16 = vpop.eup %1560  ;;  %v977_v17 = vpop.f32.mrf.mxu1 }
 0xeef   :  { %v1040_v18 = vmul.f32 %v1561_v16, %v1038_v15  ;;  %v981_v34 = vadd.f32 %v977_v17, %v960_v35  ;;  %vm1045_vm15 = vweird.f32 %v1561_v16 }
 0xef0   :  { %vm1046_vm2 = vmor %vm1044_vm1, %vm1045_vm15 }
 0xef1   :  { %v1041_v36 = vsub.f32 1.0, %v1040_v18  ;;  %v1442_v19 = vmul.f32 -1.442695, %v981_v34 }
 0xef3   :  { %1562 = vpow2.f32 %v1442_v19  ;;  %v1042_v62 = vmul.f32 %v1561_v16, %v1041_v36 }
 0xef5   :  { %v1043_v61 = vadd.f32 %v1561_v16, %v1042_v62  ;;  %v1593_v62 = vld [vmem:[%s2021_s6] ss:$0 sm:$0xff] }
 0xef6   :  { %v979_v21 = vpop.f32.mrf.mxu1 }
 0xef7   :  { %v1047_v23 = vsel %vm1046_vm2, %v1561_v16, %v1043_v61 }
 0xef8   :  { %v1052_v24 = vsel %vm1049_vm3, %v1051_v22, %v1047_v23 }
 0xef9   :  { %v1563_v48 = vpop.eup %1562  ;;  %v1054_v25 = vmul.f32 2.0, %v1052_v24  ;;  %v1056_v37 = vmul.f32 %v1052_v24, %v1952_v55 }
 0xefa   :  { %v985_v26 = vadd.f32 1.0, %v1563_v48 }
 0xefb   :  { %v1446_v27 = vadd.f32 -1.0, %v1054_v25 }
 0xefc   :  { %1564 = vrcp.f32 %v985_v26  ;;  %v997_v38 = vand.u32 2147483648, %v985_v26  ;;  %v995_v40 = vand.u32 2147483647, %v985_v26  ;;  %vm991_vm5 = vweird.f32 %v985_v26 }
 0xefd   :  { %1058 = vrot.lane.b32.xlu2 %v1446_v27, %s1671_s17 }
 0xefe   :  { %v998_v42 = vor.u32 1.1754944e-38, %v997_v38  ;;  %vm996_vm7 = vcmp.eq.f32.partialorder %v995_v40, 8.507059e+37 }
 0xf02   :  { %v1565_v29 = vpop.eup %1564 }
 0xf03   :  { %v987_v30 = vmul.f32 %v1565_v29, %v985_v26  ;;  %vm992_vm4 = vweird.f32 %v1565_v29 }
 0xf04   :  { %vm993_vm6 = vmor %vm991_vm5, %vm992_vm4 }
 0xf05   :  { %v988_v32 = vsub.f32 1.0, %v987_v30 }
 0xf07   :  { %v989_v39 = vmul.f32 %v1565_v29, %v988_v32 }
 0xf09   :  { %v990_v41 = vadd.f32 %v1565_v29, %v989_v39 }
 0xf0b   :  { %v994_v43 = vsel %vm993_vm6, %v1565_v29, %v990_v41 }
 0xf0c   :  { %v999_v45 = vsel %vm996_vm7, %v998_v42, %v994_v43 }
 0xf0d   :  { %v1001_v46 = vmul.f32 2.0, %v999_v45  ;;  %v1003_v57 = vmul.f32 %v999_v45, %v1957_v0 }
 0xf0f   :  { %v1443_v47 = vadd.f32 -1.0, %v1001_v46 }
 0xf11   :  { %1005 = vrot.lane.b32.xlu0 %v1443_v47, %s1671_s17 }
 0xf57   :  { %v1059_v49 = vpop.permute.xlu2 %1058 }
 0xf58   :  { %v1061_v50 = vmul.f32 %v1059_v49, %v1052_v24 }
 0xf5a   :  { %1063 = vrot.lane.b32.xlu1 %v1061_v50, %s1676_s1 }
 0xf83   :  { %v1006_v52 = vpop.permute.xlu0 %1005 }
 0xf84   :  { %v1008_v31 = vmul.f32 %v1006_v52, %v999_v45 }
 0xf86   :  { %1010 = vrot.lane.b32.xlu2 %v1008_v31, %s1676_s1 }
 0xfcc   :  { %v1064_v53 = vpop.permute.xlu1 %1063 }
 0xfcd   :  { %v1976_v54 = vadd.f32 %v1064_v53, %v1056_v37 }
 0xfcf   :  { %1566 = vtanh.f32 %v1976_v54 }
 0xfd5   :  { %v1567_v44 = vpop.eup %1566 }
 0xfd6   :  { %1069 = vrot.lane.b32.xlu0 %v1567_v44, %s1671_s17 }
 0xfe0   :  { %v1011_v58 = vpop.permute.xlu2 %1010 }
 0xfe1   :  { %v1981_v59 = vadd.f32 %v1011_v58, %v1003_v57 }
 0xfe3   :  { %1568 = vtanh.f32 %v1981_v59 }
 0xfe9   :  { %v1569_v2 = vpop.eup %1568 }
 0xfea   :  { %1016 = vrot.lane.b32.xlu1 %v1569_v2, %s1671_s17 }
0x1048   :  { %v1070_v28 = vpop.permute.xlu0 %1069 }
0x1049   :  { %v1072_v55 = vmul.f32 %v1070_v28, %v1052_v24 }
0x104b   :  { %v1073_v56 = vpack.c.bf16 %v1072_v55, %v1072_v55 }
0x104d   :  { %1075 = vrot.lane.b32.xlu2 %v1073_v56, %s1676_s1 }
0x105c   :  { %v1017_v4 = vpop.permute.xlu1 %1016 }
0x105d   :  { %v1019_v5 = vmul.f32 %v1017_v4, %v999_v45 }
0x105f   :  { %v1094_v7 = vpack.c.bf16 %v1019_v5, %v1019_v5 }
0x1061   :  { %1096 = vrot.lane.b32.xlu0 %v1094_v7, %s1676_s1 }
0x10a7   :  { %v1076_v8 = vpop.permute.xlu2 %1075 }
0x10a8   :  { %1447 = vmatmul.msk.bf16.vlgmr.msrb.gmra.mxu3 %vm124_vm0, %v1076_v8  ;;  %1451 = vmatmul.msk.bf16.vlgmr.msra.gmra.mxu1 %vm124_vm0, %v1076_v8 }
0x10d3   :  { %v1097_v0 = vpop.permute.xlu0 %1096 }
0x10d4   :  { %1448 = vmatmul.msk.bf16.vlgmr.msrb.gmra.mxu0 %vm124_vm0, %v1097_v0 }
0x1125   :  { %v1163_v60 = vpop.f32.mrf.mxu1 }
0x1126   :  { %v1167_v51 = vadd.f32 %v1163_v60, %v164_v9 }
0x1128   :  { %v1452_v11 = vmul.f32 -1.442695, %v1167_v51 }
0x112a   :  { %1570 = vpow2.f32 %v1452_v11 }
0x112b   :  { %v1089_v12 = vpop.f32.mrf.mxu3 }
0x112c   :  { %v1093_v6 = vadd.f32 %v1593_v62, %v1089_v12 }
0x112d   :  { %v1165_v13 = vpop.f32.mrf.mxu1 }
0x1130   :  { %v1571_v1 = vpop.eup %1570 }
0x1131   :  { %v1171_v14 = vadd.f32 1.0, %v1571_v1 }
0x1133   :  { %1572 = vrcp.f32 %v1171_v14  ;;  %v1091_v33 = vpop.f32.mrf.mxu3  ;;  %v1183_v16 = vand.u32 2147483648, %v1171_v14  ;;  %v1181_v18 = vand.u32 2147483647, %v1171_v14  ;;  %vm1177_vm9 = vweird.f32 %v1171_v14 }
0x1135   :  { %v1184_v63 = vor.u32 1.1754944e-38, %v1183_v16  ;;  %vm1182_vm11 = vcmp.eq.f32.partialorder %v1181_v18, 8.507059e+37 }
0x1139   :  { %v1573_v3 = vpop.eup %1572 }
0x113a   :  { %v1173_v15 = vmul.f32 %v1573_v3, %v1171_v14  ;;  %vm1178_vm8 = vweird.f32 %v1573_v3 }
0x113b   :  { %vm1179_vm10 = vmor %vm1177_vm9, %vm1178_vm8 }
0x113c   :  { %v1174_v35 = vsub.f32 1.0, %v1173_v15 }
0x113e   :  { %v1175_v17 = vmul.f32 %v1573_v3, %v1174_v35 }
0x1140   :  { %v1176_v34 = vadd.f32 %v1573_v3, %v1175_v17 }
0x1142   :  { %v1180_v10 = vsel %vm1179_vm10, %v1573_v3, %v1176_v34 }
0x1143   :  { %v1185_v36 = vsel %vm1182_vm11, %v1184_v63, %v1180_v10 }
0x1144   :  { %v1187_v19 = vmul.f32 2.0, %v1185_v36  ;;  %v1189_v50 = vmul.f32 %v1185_v36, %v1976_v54 }
0x1146   :  { %v1453_v20 = vadd.f32 -1.0, %v1187_v19 }
0x1148   :  { %1191 = vrot.lane.b32.xlu1 %v1453_v20, %s1671_s17 }
0x1151   :  { %v1110_v61 = vpop.f32.mrf.mxu0 }
0x1152   :  { %v1114_v21 = vadd.f32 %v1110_v61, %v1093_v6 }
0x1154   :  { %v1449_v22 = vmul.f32 -1.442695, %v1114_v21  ;;  %v1481_v21 = vld [vmem:[#allocation5 + $0x8] sm:$0xff] }
0x1155   :  { %1319 = vmatpush.bf16.msra.mxu0 %v1481_v21 }
0x1156   :  { %1574 = vpow2.f32 %v1449_v22  ;;  %v1480_v22 = vld [vmem:[#allocation5] sm:$0xff] }
0x1159   :  { %v1112_v23 = vpop.f32.mrf.mxu0  ;;  %1320 = vmatpush.bf16.msra.mxu0 %v1480_v22 }
0x115c   :  { %v1575_v24 = vpop.eup %1574 }
0x115d   :  { %v1118_v48 = vadd.f32 1.0, %v1575_v24 }
0x115f   :  { %1576 = vrcp.f32 %v1118_v48  ;;  %v1130_v29 = vand.u32 2147483648, %v1118_v48  ;;  %v1128_v32 = vand.u32 2147483647, %v1118_v48  ;;  %vm1124_vm13 = vweird.f32 %v1118_v48 }
0x1161   :  { %v1131_v39 = vor.u32 1.1754944e-38, %v1130_v29  ;;  %vm1129_vm15 = vcmp.eq.f32.partialorder %v1128_v32, 8.507059e+37 }
0x1165   :  { %v1577_v25 = vpop.eup %1576 }
0x1166   :  { %v1120_v26 = vmul.f32 %v1577_v25, %v1118_v48  ;;  %vm1125_vm12 = vweird.f32 %v1577_v25 }
0x1167   :  { %vm1126_vm14 = vmor %vm1124_vm13, %vm1125_vm12 }
0x1168   :  { %v1121_v27 = vsub.f32 1.0, %v1120_v26  ;;  %v1491_v26 = vld [vmem:[#allocation7] ss:$0 sm:$0xff] }
0x116a   :  { %v1122_v30 = vmul.f32 %v1577_v25, %v1121_v27 }
0x116c   :  { %v1123_v38 = vadd.f32 %v1577_v25, %v1122_v30 }
0x116e   :  { %v1127_v40 = vsel %vm1126_vm14, %v1577_v25, %v1123_v38 }
0x116f   :  { %v1132_v41 = vsel %vm1129_vm15, %v1131_v39, %v1127_v40 }
0x1170   :  { %v1134_v42 = vmul.f32 2.0, %v1132_v41  ;;  %v1136_v53 = vmul.f32 %v1132_v41, %v1981_v59 }
0x1172   :  { %v1450_v43 = vadd.f32 -1.0, %v1134_v42 }
0x1174   :  { %1138 = vrot.lane.b32.xlu2 %v1450_v43, %s1671_s17 }
0x11ba   :  { %v1192_v45 = vpop.permute.xlu1 %1191 }
0x11bb   :  { %v1194_v46 = vmul.f32 %v1192_v45, %v1185_v36 }
0x11bd   :  { %1196 = vrot.lane.b32.xlu0 %v1194_v46, %s1676_s1 }
0x11ce   :  { %v1139_v47 = vpop.permute.xlu2 %1138 }
0x11cf   :  { %v1141_v49 = vmul.f32 %v1139_v47, %v1132_v41 }
0x11d1   :  { %1143 = vrot.lane.b32.xlu1 %v1141_v49, %s1676_s1 }
0x122f   :  { %v1197_v52 = vpop.permute.xlu0 %1196 }
0x1230   :  { %v1199_v31 = vadd.f32 %v1197_v52, %v1189_v50 }
0x1232   :  { %1578 = vtanh.f32 %v1199_v31 }
0x1238   :  { %v1579_v37 = vpop.eup %1578 }
0x1239   :  { %1202 = vrot.lane.b32.xlu2 %v1579_v37, %s1671_s17 }
0x1243   :  { %v1144_v44 = vpop.permute.xlu1 %1143 }
0x1244   :  { %v1146_v57 = vadd.f32 %v1144_v44, %v1136_v53 }
0x1246   :  { %1580 = vtanh.f32 %v1146_v57 }
0x124c   :  { %v1581_v58 = vpop.eup %1580 }
0x124d   :  { %1149 = vrot.lane.b32.xlu0 %v1581_v58, %s1671_s17 }
0x1293   :  { %v1203_v2 = vpop.permute.xlu2 %1202 }
0x1294   :  { %v1205_v28 = vmul.f32 %v1203_v2, %v1185_v36 }
0x1296   :  { %v1206_v55 = vpack.c.bf16 %v1205_v28, %v1205_v28 }
0x1298   :  { %1208 = vrot.lane.b32.xlu1 %v1206_v55, %s1676_s1 }
0x12bf   :  { %v1150_v54 = vpop.permute.xlu0 %1149 }
0x12c0   :  { %v1152_v56 = vmul.f32 %v1150_v54, %v1132_v41 }
0x12c2   :  { %v1227_v4 = vpack.c.bf16 %v1152_v56, %v1152_v56 }
0x12c4   :  { %1229 = vrot.lane.b32.xlu2 %v1227_v4, %s1676_s1 }
0x130a   :  { %v1209_v5 = vpop.permute.xlu1 %1208 }
0x130b   :  { %1454 = vmatmul.msk.bf16.vlgmr.msra.gmra.mxu2 %vm124_vm0, %v1209_v5 }
0x131e   :  { %v1230_v59 = vpop.permute.xlu2 %1229 }
0x131f   :  { %1455 = vmatmul.msk.bf16.vlgmr.msra.gmra.mxu3 %vm124_vm0, %v1230_v59 }
0x138e   :  { %v1222_v7 = vpop.f32.mrf.mxu2 }
0x138f   :  { %v1226_v0 = vadd.f32 %v1593_v62, %v1222_v7 }
0x1396   :  { %v1224_v8 = vpop.f32.mrf.mxu2 }
0x13a2   :  { %v1243_v9 = vpop.f32.mrf.mxu3 }
0x13a3   :  { %v1247_v60 = vadd.f32 %v1243_v9, %v1226_v0 }
0x13a5   :  { %v1456_v51 = vmul.f32 -1.442695, %v1247_v60 }
0x13a7   :  { %1582 = vpow2.f32 %v1456_v51 }
0x13aa   :  { %v1245_v11 = vpop.f32.mrf.mxu3 }
0x13ad   :  { %v1583_v12 = vpop.eup %1582 }
0x13ae   :  { %v1251_v13 = vadd.f32 1.0, %v1583_v12 }
0x13b0   :  { %1584 = vrcp.f32 %v1251_v13  ;;  %v1263_v3 = vand.u32 2147483648, %v1251_v13  ;;  %v1261_v35 = vand.u32 2147483647, %v1251_v13  ;;  %vm1257_vm2 = vweird.f32 %v1251_v13 }
0x13b2   :  { %v1264_v17 = vor.u32 1.1754944e-38, %v1263_v3  ;;  %vm1262_vm4 = vcmp.eq.f32.partialorder %v1261_v35, 8.507059e+37 }
0x13b6   :  { %v1585_v1 = vpop.eup %1584 }
0x13b7   :  { %v1253_v14 = vmul.f32 %v1585_v1, %v1251_v13  ;;  %vm1258_vm1 = vweird.f32 %v1585_v1 }
0x13b8   :  { %vm1259_vm3 = vmor %vm1257_vm2, %vm1258_vm1 }
0x13b9   :  { %v1254_v33 = vsub.f32 1.0, %v1253_v14 }
0x13bb   :  { %v1255_v15 = vmul.f32 %v1585_v1, %v1254_v33 }
0x13bd   :  { %v1256_v16 = vadd.f32 %v1585_v1, %v1255_v15 }
0x13bf   :  { %v1260_v18 = vsel %vm1259_vm3, %v1585_v1, %v1256_v16 }
0x13c0   :  { %v1265_v34 = vsel %vm1262_vm4, %v1264_v17, %v1260_v18 }
0x13c1   :  { %v1267_v63 = vmul.f32 2.0, %v1265_v34  ;;  %v1269_v20 = vmul.f32 %v1265_v34, %v1146_v57 }
0x13c3   :  { %v1457_v10 = vadd.f32 -1.0, %v1267_v63 }
0x13c5   :  { %1271 = vrot.lane.b32.xlu0 %v1457_v10, %s1671_s17 }
0x1437   :  { %v1272_v36 = vpop.permute.xlu0 %1271 }
0x1438   :  { %v1274_v19 = vmul.f32 %v1272_v36, %v1265_v34 }
0x143a   :  { %1276 = vrot.lane.b32.xlu1 %v1274_v19, %s1676_s1 }
0x14ac   :  { %v1277_v62 = vpop.permute.xlu1 %1276 }
0x14ad   :  { %v1279_v6 = vadd.f32 %v1277_v62, %v1269_v20 }
0x14af   :  { %1586 = vtanh.f32 %v1279_v6 }
0x14b5   :  { %v1587_v61 = vpop.eup %1586 }
0x14b6   :  { %1282 = vrot.lane.b32.xlu2 %v1587_v61, %s1671_s17 }
0x1510   :  { %v1283_v23 = vpop.permute.xlu2 %1282 }
0x1511   :  { %v1285_v24 = vmul.f32 %v1283_v23, %v1265_v34 }
0x1513   :  { %v1286_v48 = vpack.c.bf16 %v1285_v24, %v1285_v24 }
0x1515   :  { %1296 = vrot.lane.b32.xlu0 %v1286_v48, %s1676_s1 }
0x1587   :  { %v1297_v25 = vpop.permute.xlu0 %1296 }
0x1588   :  { %1466 = vmatmul.msk.bf16.vlgmr.msra.gmra.mxu0 %vm124_vm0, %v1297_v25 }
0x1605   :  { %v1322_v27 = vpop.f32.mrf.mxu0 }
0x1606   :  { %v1323_v29 = vadd.f32 %v1491_v26, %v1322_v27 }
0x1608   :  { %v1467_v30 = vmul.f32 -1.442695, %v1323_v29 }
0x160a   :  { %1588 = vpow2.f32 %v1467_v30 }
0x160d   :  { %v1324_v32 = vpop.f32.mrf.mxu0 }
0x1610   :  { %v1589_v38 = vpop.eup %1588 }
0x1611   :  { %v1329_v39 = vadd.f32 1.0, %v1589_v38 }
0x1613   :  { %1590 = vrcp.f32 %v1329_v39  ;;  %v1341_v43 = vand.u32 2147483648, %v1329_v39  ;;  %v1339_v46 = vand.u32 2147483647, %v1329_v39  ;;  %vm1335_vm6 = vweird.f32 %v1329_v39 }
0x1615   :  { %v1342_v49 = vor.u32 1.1754944e-38, %v1341_v43  ;;  %vm1340_vm0 = vcmp.eq.f32.partialorder %v1339_v46, 8.507059e+37 }
0x1619   :  { %v1591_v40 = vpop.eup %1590 }
0x161a   :  { %v1331_v41 = vmul.f32 %v1591_v40, %v1329_v39  ;;  %vm1336_vm5 = vweird.f32 %v1591_v40 }
0x161b   :  { %vm1337_vm7 = vmor %vm1335_vm6, %vm1336_vm5 }
0x161c   :  { %v1332_v42 = vsub.f32 1.0, %v1331_v41 }
0x161e   :  { %v1333_v45 = vmul.f32 %v1591_v40, %v1332_v42 }
0x1620   :  { %v1334_v47 = vadd.f32 %v1591_v40, %v1333_v45 }
0x1622   :  { %v1338_v50 = vsel %vm1337_vm7, %v1591_v40, %v1334_v47 }
0x1623   :  { %v1343_v52 = vsel %vm1340_vm0, %v1342_v49, %v1338_v50 }
0x1624   :  { %1345 = vst [vmem:[%s2024_s9] sm:$0xff] %v1343_v52 }
0x1625   :  { %1350 = vsyncpa [#allocation4], 1 }
0x1626   :  { %1351 = vsyncpa [#allocation6], 1 }

</bundles_post_ra>
